<compile_context>
chip_gen: v6e
topology: v6e:2x2x1
jax: 0.10.0
libtpu: 0.0.40
codegen_flags: <defaults>
</compile_context>

<pallas_src>
import jax
import jax.numpy as jnp
import numpy as np
from jax.experimental import pallas as pl
from jax.experimental.pallas import tpu as pltpu

# ---- problem sizes derived from Model6 -------------------------------------
B = 32                                  # batch_size hard-coded in forward()
NMUSCLES = 4                            # smallest synthetic choice consistent with fc1=260
L = 20 * NMUSCLES                       # 80
K1, K2 = 5 * NMUSCLES, 10 * NMUSCLES    # conv kernel sizes 20, 40
STRIDE = NMUSCLES                       # conv stride 4
COUT = 20                               # conv out channels
T1 = (L - K1) // STRIDE + 1             # 16
T2 = (L - K2) // STRIDE + 1             # 11
P1, P2 = T1 // 2, T2 // 2               # 8, 5  (MaxPool1d(2); last odd step dropped)
NT = P1 + P2                            # 13 pooled time steps
FP1, FP2 = P1 * COUT, P2 * COUT         # 160, 100
FEAT = FP1 + FP2                        # 260
FEAT_PAD = 384                          # FEAT rounded up to a lane multiple
PK = P1 * K1 + P2 * K2                  # 360 patch columns (conv1 + conv2)
H1, H2, H3 = 1024, 512, 128

# packed "smalls" layout (all segment starts are 128-aligned)
SM_BB, SM_B2, SM_B3, SM_W4, SM_B4, SM_W = 0, 384, 896, 1024, 1152, 1280


def _pick_nh1():
    """Grid sizing per chip generation (perf review):
    v6e/v7x: the whole <2 MB weight fetch costs less than one grid-step overhead -> 1 step.
    v5e & older: per-step weight DMA > per-step compute -> keep 2 steps so DMA overlaps."""
    try:
        kind = jax.devices()[0].device_kind.lower()
    except Exception:
        return 2
    return 1 if ("v6" in kind or "v7" in kind) else 2


NH1 = _pick_nh1()                       # number of fc1-column / fc2-row tiles (grid size)
TH = H1 // NH1                          # 1024 or 512

# ---- static index tables ----------------------------------------------------
def _patch_cols(k, p):
    t = np.arange(p)[:, None]
    kk = np.arange(k)[None, :]
    even = ((2 * t) * STRIDE + kk).reshape(-1)
    odd = ((2 * t + 1) * STRIDE + kk).reshape(-1)
    return even, odd

_IDX1E, _IDX1O = _patch_cols(K1, P1)        # (160,), (160,)
_IDX2E, _IDX2O = _patch_cols(K2, P2)        # (200,), (200,)

# fc1 row permutation: kernel row (t*COUT + c)  <-  PyTorch row (c*NT + t)
_W1_PERM = (np.arange(COUT)[None, :] * NT + np.arange(NT)[:, None]).reshape(-1)


# ---- fused Pallas kernel -----------------------------------------------------
def fused_kernel(p_ref, bd_ref, sm_ref, w1_ref, b1_ref, w2_ref, w3_ref,
                 out_ref, feat_ref, acc2_ref):
    i = pl.program_id(0)

    @pl.when(i == 0)
    def _conv_stage():
        # Both convs in one matmul: even/odd pooling streams stacked along rows,
        # block-diagonal (lane-padded to 384 cols) weight gives the time-major
        # flattened conv output directly; MaxPool1d(2) = max of the two row halves.
        z = jnp.dot(p_ref[...], bd_ref[...], preferred_element_type=jnp.float32)
        z = jnp.maximum(z + sm_ref[:, SM_BB:SM_BB + FEAT_PAD], 0.0)       # (2B, 384)
        feat_ref[...] = jnp.maximum(z[:B, :], z[B:, :]).astype(jnp.bfloat16)
        acc2_ref[...] = jnp.zeros_like(acc2_ref)

    # fc1 column tile (single K=384 contraction) + partial fc2 accumulation
    # (bf16 operands, f32 accumulation).
    h1 = (jnp.dot(feat_ref[...], w1_ref[...], preferred_element_type=jnp.float32)
          + b1_ref[...])
    h1 = jnp.maximum(h1, 0.0)
    acc2_ref[...] += jnp.dot(h1.astype(jnp.bfloat16), w2_ref[...],
                             preferred_element_type=jnp.float32)

    @pl.when(i == pl.num_programs(0) - 1)
    def _head():
        h2 = jnp.maximum(acc2_ref[...] + sm_ref[:, SM_B2:SM_B2 + H2], 0.0)
        h3 = (jnp.dot(h2.astype(jnp.bfloat16), w3_ref[...],
                      preferred_element_type=jnp.float32)
              + sm_ref[:, SM_B3:SM_B3 + H3])
        h3 = jnp.maximum(h3, 0.0)
        # fc4 has a single output unit: mul + lane reduction (keeps N=1 off the MXU)
        z4 = (jnp.sum(h3 * sm_ref[:, SM_W4:SM_W4 + H3], axis=1, keepdims=True)
              + sm_ref[:, SM_B4:SM_B4 + 1])
        out_ref[...] = jax.nn.sigmoid(z4)


def _resident(shape):
    # whole array, same block for every grid step (fetched once, stays in VMEM)
    return pl.BlockSpec(shape, lambda i: (0, 0))


@jax.jit
def model6_forward(x, kp):
    # tiny XLA glue: gather patches; even/odd pooling streams stacked along rows,
    # conv1|conv2 patch columns side by side; bf16 for half the DMA.
    p_even = jnp.concatenate([x[:, _IDX1E], x[:, _IDX2E]], axis=1)    # (B, 360)
    p_odd = jnp.concatenate([x[:, _IDX1O], x[:, _IDX2O]], axis=1)     # (B, 360)
    patches = jnp.concatenate([p_even, p_odd], axis=0).astype(jnp.bfloat16)  # (2B, 360)

    grid_spec = pltpu.PrefetchScalarGridSpec(
        num_scalar_prefetch=0,
        grid=(NH1,),
        in_specs=[
            _resident((2 * B, PK)),                        # patches (bf16)
            _resident((PK, FEAT_PAD)),                     # block-diag conv weight (bf16)
            _resident((1, SM_W)),                          # packed small vectors (f32)
            pl.BlockSpec((FEAT_PAD, TH), lambda i: (0, i)),  # w1 tile (bf16, padded rows)
            pl.BlockSpec((1, TH), lambda i: (0, i)),         # b1 tile (f32)
            pl.BlockSpec((TH, H2), lambda i: (i, 0)),        # w2 tile (bf16)
            _resident((H2, H3)),                           # w3 (bf16)
        ],
        out_specs=pl.BlockSpec((B, 1), lambda i: (0, 0)),
        scratch_shapes=[
            pltpu.VMEM((B, FEAT_PAD), jnp.bfloat16),       # pooled features (lane-padded)
            pltpu.VMEM((B, H2), jnp.float32),              # fc2 accumulator
        ],
    )

    return pl.pallas_call(
        fused_kernel,
        out_shape=jax.ShapeDtypeStruct((B, 1), jnp.float32),
        grid_spec=grid_spec,
        compiler_params=pltpu.CompilerParams(dimension_semantics=("arbitrary",)),
    )(patches, kp["bd"], kp["sm"], kp["w1"], kp["b1"], kp["w2"], kp["w3"])


# ---- parameters --------------------------------------------------------------
def init_params(key):
    """PyTorch-layout parameters (f32): conv weights (k, COUT), linear weights (in, out),
    fc1 rows in PyTorch's c*13+t flatten order."""
    ks = jax.random.split(key, 12)

    def u(k, shape, fan_in):
        bound = 1.0 / np.sqrt(fan_in)
        return jax.random.uniform(k, shape, jnp.float32, -bound, bound)

    return dict(
        wc1=u(ks[0], (K1, COUT), K1), bc1=u(ks[1], (1, COUT), K1),
        wc2=u(ks[2], (K2, COUT), K2), bc2=u(ks[3], (1, COUT), K2),
        w1=u(ks[4], (FEAT, H1), FEAT), b1=u(ks[5], (1, H1), FEAT),
        w2=u(ks[6], (H1, H2), H1),     b2=u(ks[7], (1, H2), H1),
        w3=u(ks[8], (H2, H3), H2),     b3=u(ks[9], (1, H3), H2),
        w4=u(ks[10], (1, H3), H3),     b4=u(ks[11], (1, 1), H3),
    )


def prepare_params(p):
    """One-time repack into kernel layout:
      * single lane-padded block-diagonal conv weight (bf16),
      * time-major (row-permuted), zero-row-padded fc1 weight (bf16),
      * bf16 storage for the other large MLP weights,
      * all small bias-like vectors packed into one resident f32 array."""
    bd = jnp.zeros((PK, FEAT_PAD), jnp.float32)
    bd = bd.at[:P1 * K1, :FP1].set(jnp.kron(jnp.eye(P1, dtype=jnp.float32), p["wc1"]))
    bd = bd.at[P1 * K1:, FP1:FEAT].set(jnp.kron(jnp.eye(P2, dtype=jnp.float32), p["wc2"]))

    bb = jnp.concatenate([jnp.tile(p["bc1"].reshape(-1), P1),
                          jnp.tile(p["bc2"].reshape(-1), P2),
                          jnp.zeros((FEAT_PAD - FEAT,), jnp.float32)])

    sm = jnp.zeros((1, SM_W), jnp.float32)
    sm = sm.at[0, SM_BB:SM_BB + FEAT_PAD].set(bb)
    sm = sm.at[0, SM_B2:SM_B2 + H2].set(p["b2"].reshape(-1))
    sm = sm.at[0, SM_B3:SM_B3 + H3].set(p["b3"].reshape(-1))
    sm = sm.at[0, SM_W4:SM_W4 + H3].set(p["w4"].reshape(-1))
    sm = sm.at[0, SM_B4].set(p["b4"][0, 0])

    w1 = jnp.zeros((FEAT_PAD, H1), jnp.float32)
    w1 = w1.at[:FEAT, :].set(p["w1"][_W1_PERM, :])

    return dict(
        bd=bd.astype(jnp.bfloat16),
        sm=sm,
        w1=w1.astype(jnp.bfloat16),
        b1=p["b1"],
        w2=p["w2"].astype(jnp.bfloat16),
        w3=p["w3"].astype(jnp.bfloat16),
    )


# ---- pure-JAX reference (mirrors the PyTorch forward) ------------------------
def reference(x, p, low_dtype=jnp.float32):
    """low_dtype=bf16 reproduces the kernel's mixed precision (bf16 matmul operands,
    f32 accumulation, f32 biases); low_dtype=f32 is the full-precision PyTorch path."""
    def q(a):
        return a.astype(low_dtype).astype(jnp.float32)

    def conv1d(w, b, k):
        T = (L - k) // STRIDE + 1
        idx = np.arange(T)[:, None] * STRIDE + np.arange(k)[None, :]
        patches = q(x)[:, idx]                                     # (B, T, k)
        out = jnp.einsum('btk,kc->bct', patches, q(w),
                         preferred_element_type=jnp.float32) + b.reshape(1, COUT, 1)
        return jax.nn.relu(out)

    def mp(c):
        T = c.shape[-1] // 2
        return jnp.max(c[..., :2 * T].reshape(B, COUT, T, 2), axis=-1)

    c = jnp.concatenate([mp(conv1d(p["wc1"], p["bc1"], K1)),
                         mp(conv1d(p["wc2"], p["bc2"], K2))], axis=2)   # (B, 20, 13)
    h = c.reshape(B, FEAT)                                              # c*13 + t flatten

    def dense(h, w, b):
        return jax.nn.relu(
            jnp.dot(q(h), q(w), preferred_element_type=jnp.float32) + b)

    h = dense(h, p["w1"], p["b1"])
    h = dense(h, p["w2"], p["b2"])
    h = dense(h, p["w3"], p["b3"])
    return jax.nn.sigmoid(jnp.sum(h * p["w4"], axis=1, keepdims=True) + p["b4"])


if __name__ == "__main__":
    key = jax.random.PRNGKey(0)
    kx, kparam = jax.random.split(key)
    x = jax.random.normal(kx, (B, L), dtype=jnp.float32)   # (32, 80)
    params = init_params(kparam)
    kernel_params = prepare_params(params)

    out = jax.block_until_ready(model6_forward(x, kernel_params))
    assert out.shape == (B, 1)

    # tight check against the same mixed-precision math the kernel uses
    ref_match = jax.block_until_ready(reference(x, params, low_dtype=jnp.bfloat16))
    np.testing.assert_allclose(np.asarray(out), np.asarray(ref_match), rtol=1e-3, atol=1e-3)

    # loose sanity check against the full-f32 PyTorch-equivalent forward
    ref_f32 = jax.block_until_ready(reference(x, params, low_dtype=jnp.float32))
    np.testing.assert_allclose(np.asarray(out), np.asarray(ref_f32), rtol=3e-2, atol=3e-2)

    print("KERNEL_OK")
</pallas_src>

<mosaic_0001>
module attributes {stable_mosaic.version = 11 : i64} {
  func.func @fused_kernel(%arg0: i32, %arg1: memref<64x360xbf16, #tpu.memory_space<vmem>>, %arg2: memref<360x384xbf16, #tpu.memory_space<vmem>>, %arg3: memref<1x1280xf32, #tpu.memory_space<vmem>>, %arg4: memref<384x512xbf16, #tpu.memory_space<vmem>>, %arg5: memref<1x512xf32, #tpu.memory_space<vmem>>, %arg6: memref<512x512xbf16, #tpu.memory_space<vmem>>, %arg7: memref<512x128xbf16, #tpu.memory_space<vmem>>, %arg8: memref<32x1xf32, #tpu.memory_space<vmem>>, %arg9: memref<32x384xbf16, #tpu.memory_space<vmem>>, %arg10: memref<32x512xf32, #tpu.memory_space<vmem>>) attributes {dimension_semantics = [#tpu.dimension_semantics<arbitrary>], iteration_bounds = array<i64: 2>, scalar_prefetch = 0 : i64, scratch_operands = 2 : i64, tpu.core_type = #tpu.core_type<tc>, window_params = [{pipeline_mode = #tpu.pipeline_mode<synchronous>, transform_indices = @transform_0, window_bounds = array<i64: 64, 360>}, {pipeline_mode = #tpu.pipeline_mode<synchronous>, transform_indices = @transform_1, window_bounds = array<i64: 360, 384>}, {pipeline_mode = #tpu.pipeline_mode<synchronous>, transform_indices = @transform_2, window_bounds = array<i64: 1, 1280>}, {transform_indices = @transform_3, window_bounds = array<i64: 384, 512>}, {transform_indices = @transform_4, window_bounds = array<i64: 1, 512>}, {transform_indices = @transform_5, window_bounds = array<i64: 512, 512>}, {pipeline_mode = #tpu.pipeline_mode<synchronous>, transform_indices = @transform_6, window_bounds = array<i64: 512, 128>}, {pipeline_mode = #tpu.pipeline_mode<synchronous>, transform_indices = @transform_7, window_bounds = array<i64: 32, 1>}]} {
    %c0_i32 = arith.constant 0 : i32
    %0 = arith.cmpi eq, %arg0, %c0_i32 : i32
    %1 = arith.extui %0 : i1 to i32
    %c0_i32_0 = arith.constant 0 : i32
    %2 = arith.cmpi ne, %1, %c0_i32_0 : i32
    scf.if %2 {
      %c0_15 = arith.constant 0 : index
      %c0_16 = arith.constant 0 : index
      %20 = vector.load %arg1[%c0_15, %c0_16] : memref<64x360xbf16, #tpu.memory_space<vmem>>, vector<64x360xbf16>
      %c0_17 = arith.constant 0 : index
      %c0_18 = arith.constant 0 : index
      %21 = vector.load %arg2[%c0_17, %c0_18] : memref<360x384xbf16, #tpu.memory_space<vmem>>, vector<360x384xbf16>
      %cst_19 = arith.constant dense<0.000000e+00> : vector<64x384xf32>
      %22 = tpu.matmul %20, %21, %cst_19 {dimension_numbers = #tpu.dot_dimension_numbers<[1], [0], [0], [1], [0, 0, 1, 1], [], []>} : vector<64x360xbf16>, vector<360x384xbf16>, vector<64x384xf32> -> vector<64x384xf32>
      %c0_20 = arith.constant 0 : index
      %c0_21 = arith.constant 0 : index
      %23 = vector.load %arg3[%c0_20, %c0_21] : memref<1x1280xf32, #tpu.memory_space<vmem>>, vector<1x384xf32>
      %24 = vector.broadcast %23 : vector<1x384xf32> to vector<64x384xf32>
      %25 = arith.addf %22, %24 : vector<64x384xf32>
      %cst_22 = arith.constant 0.000000e+00 : f32
      %26 = vector.broadcast %cst_22 : f32 to vector<64x384xf32>
      %27 = arith.maximumf %25, %26 : vector<64x384xf32>
      %28 = vector.extract_strided_slice %27 {offsets = [0, 0], sizes = [32, 384], strides = [1, 1]} : vector<64x384xf32> to vector<32x384xf32>
      %29 = vector.extract_strided_slice %27 {offsets = [32, 0], sizes = [32, 384], strides = [1, 1]} : vector<64x384xf32> to vector<32x384xf32>
      %30 = arith.maximumf %28, %29 : vector<32x384xf32>
      %31 = arith.truncf %30 : vector<32x384xf32> to vector<32x384xbf16>
      %c0_23 = arith.constant 0 : index
      %c0_24 = arith.constant 0 : index
      %32 = vector.load %arg9[%c0_23, %c0_24] : memref<32x384xbf16, #tpu.memory_space<vmem>>, vector<32x384xbf16>
      tpu.vector_store %arg9[%c0_23, %c0_24], %31 {strides = array<i32>} : memref<32x384xbf16, #tpu.memory_space<vmem>>, vector<32x384xbf16>,
      %cst_25 = arith.constant 0.000000e+00 : f32
      %33 = vector.broadcast %cst_25 : f32 to vector<32x512xf32>
      %c0_26 = arith.constant 0 : index
      %c0_27 = arith.constant 0 : index
      %34 = vector.load %arg10[%c0_26, %c0_27] : memref<32x512xf32, #tpu.memory_space<vmem>>, vector<32x512xf32>
      tpu.vector_store %arg10[%c0_26, %c0_27], %33 {strides = array<i32>} : memref<32x512xf32, #tpu.memory_space<vmem>>, vector<32x512xf32>,
    } else {
    }
    %c0 = arith.constant 0 : index
    %c0_1 = arith.constant 0 : index
    %3 = vector.load %arg9[%c0, %c0_1] : memref<32x384xbf16, #tpu.memory_space<vmem>>, vector<32x384xbf16>
    %c0_2 = arith.constant 0 : index
    %c0_3 = arith.constant 0 : index
    %4 = vector.load %arg4[%c0_2, %c0_3] : memref<384x512xbf16, #tpu.memory_space<vmem>>, vector<384x512xbf16>
    %cst = arith.constant dense<0.000000e+00> : vector<32x512xf32>
    %5 = tpu.matmul %3, %4, %cst {dimension_numbers = #tpu.dot_dimension_numbers<[1], [0], [0], [1], [0, 0, 1, 1], [], []>} : vector<32x384xbf16>, vector<384x512xbf16>, vector<32x512xf32> -> vector<32x512xf32>
    %c0_4 = arith.constant 0 : index
    %c0_5 = arith.constant 0 : index
    %6 = vector.load %arg5[%c0_4, %c0_5] : memref<1x512xf32, #tpu.memory_space<vmem>>, vector<1x512xf32>
    %7 = vector.broadcast %6 : vector<1x512xf32> to vector<32x512xf32>
    %8 = arith.addf %5, %7 : vector<32x512xf32>
    %cst_6 = arith.constant 0.000000e+00 : f32
    %9 = vector.broadcast %cst_6 : f32 to vector<32x512xf32>
    %10 = arith.maximumf %8, %9 : vector<32x512xf32>
    %c0_7 = arith.constant 0 : index
    %c0_8 = arith.constant 0 : index
    %11 = vector.load %arg10[%c0_7, %c0_8] : memref<32x512xf32, #tpu.memory_space<vmem>>, vector<32x512xf32>
    %12 = arith.truncf %10 : vector<32x512xf32> to vector<32x512xbf16>
    %c0_9 = arith.constant 0 : index
    %c0_10 = arith.constant 0 : index
    %13 = vector.load %arg6[%c0_9, %c0_10] : memref<512x512xbf16, #tpu.memory_space<vmem>>, vector<512x512xbf16>
    %cst_11 = arith.constant dense<0.000000e+00> : vector<32x512xf32>
    %14 = tpu.matmul %12, %13, %cst_11 {dimension_numbers = #tpu.dot_dimension_numbers<[1], [0], [0], [1], [0, 0, 1, 1], [], []>} : vector<32x512xbf16>, vector<512x512xbf16>, vector<32x512xf32> -> vector<32x512xf32>
    %15 = arith.addf %11, %14 : vector<32x512xf32>
    %c0_12 = arith.constant 0 : index
    %c0_13 = arith.constant 0 : index
    %16 = vector.load %arg10[%c0_12, %c0_13] : memref<32x512xf32, #tpu.memory_space<vmem>>, vector<32x512xf32>
    tpu.vector_store %arg10[%c0_12, %c0_13], %15 {strides = array<i32>} : memref<32x512xf32, #tpu.memory_space<vmem>>, vector<32x512xf32>,
    %c1_i32 = arith.constant 1 : i32
    %17 = arith.cmpi eq, %arg0, %c1_i32 : i32
    %18 = arith.extui %17 : i1 to i32
    %c0_i32_14 = arith.constant 0 : i32
    %19 = arith.cmpi ne, %18, %c0_i32_14 : i32
    scf.if %19 {
      %c0_15 = arith.constant 0 : index
      %c0_16 = arith.constant 0 : index
      %20 = vector.load %arg10[%c0_15, %c0_16] : memref<32x512xf32, #tpu.memory_space<vmem>>, vector<32x512xf32>
      %c0_17 = arith.constant 0 : index
      %c384 = arith.constant 384 : index
      %21 = vector.load %arg3[%c0_17, %c384] : memref<1x1280xf32, #tpu.memory_space<vmem>>, vector<1x512xf32>
      %22 = vector.broadcast %21 : vector<1x512xf32> to vector<32x512xf32>
      %23 = arith.addf %20, %22 : vector<32x512xf32>
      %cst_18 = arith.constant 0.000000e+00 : f32
      %24 = vector.broadcast %cst_18 : f32 to vector<32x512xf32>
      %25 = arith.maximumf %23, %24 : vector<32x512xf32>
      %26 = arith.truncf %25 : vector<32x512xf32> to vector<32x512xbf16>
      %c0_19 = arith.constant 0 : index
      %c0_20 = arith.constant 0 : index
      %27 = vector.load %arg7[%c0_19, %c0_20] : memref<512x128xbf16, #tpu.memory_space<vmem>>, vector<512x128xbf16>
      %cst_21 = arith.constant dense<0.000000e+00> : vector<32x128xf32>
      %28 = tpu.matmul %26, %27, %cst_21 {dimension_numbers = #tpu.dot_dimension_numbers<[1], [0], [0], [1], [0, 0, 1, 1], [], []>} : vector<32x512xbf16>, vector<512x128xbf16>, vector<32x128xf32> -> vector<32x128xf32>
      %c0_22 = arith.constant 0 : index
      %c896 = arith.constant 896 : index
      %29 = vector.load %arg3[%c0_22, %c896] : memref<1x1280xf32, #tpu.memory_space<vmem>>, vector<1x128xf32>
      %30 = vector.broadcast %29 : vector<1x128xf32> to vector<32x128xf32>
      %31 = arith.addf %28, %30 : vector<32x128xf32>
      %cst_23 = arith.constant 0.000000e+00 : f32
      %32 = vector.broadcast %cst_23 : f32 to vector<32x128xf32>
      %33 = arith.maximumf %31, %32 : vector<32x128xf32>
      %c0_24 = arith.constant 0 : index
      %c1024 = arith.constant 1024 : index
      %34 = vector.load %arg3[%c0_24, %c1024] : memref<1x1280xf32, #tpu.memory_space<vmem>>, vector<1x128xf32>
      %35 = vector.broadcast %34 : vector<1x128xf32> to vector<32x128xf32>
      %36 = arith.mulf %33, %35 : vector<32x128xf32>
      %cst_25 = arith.constant dense<0.000000e+00> : vector<32xf32>
      %37 = vector.multi_reduction <add>, %36, %cst_25 [1] : vector<32x128xf32> to vector<32xf32>
      %38 = vector.shape_cast %37 : vector<32xf32> to vector<32x1xf32>
      %c0_26 = arith.constant 0 : index
      %c1152 = arith.constant 1152 : index
      %39 = vector.load %arg3[%c0_26, %c1152] : memref<1x1280xf32, #tpu.memory_space<vmem>>, vector<1x1xf32>
      %40 = vector.broadcast %39 : vector<1x1xf32> to vector<32x1xf32>
      %41 = arith.addf %38, %40 : vector<32x1xf32>
      %42 = arith.negf %41 : vector<32x1xf32>
      %43 = math.exp %42 : vector<32x1xf32>
      %cst_27 = arith.constant 1.000000e+00 : f32
      %44 = vector.broadcast %cst_27 : f32 to vector<32x1xf32>
      %45 = arith.addf %44, %43 : vector<32x1xf32>
      %46 = arith.divf %44, %45 : vector<32x1xf32>
      %c0_28 = arith.constant 0 : index
      %c0_29 = arith.constant 0 : index
      %47 = vector.load %arg8[%c0_28, %c0_29] : memref<32x1xf32, #tpu.memory_space<vmem>>, vector<32x1xf32>
      tpu.vector_store %arg8[%c0_28, %c0_29], %46 {strides = array<i32>} : memref<32x1xf32, #tpu.memory_space<vmem>>, vector<32x1xf32>,
    } else {
    }
    return
  }
  func.func @transform_0(%arg0: i32) -> (i32, i32) {
    %c0_i32 = arith.constant 0 : i32
    %c0_i32_0 = arith.constant 0 : i32
    %c0_i32_1 = arith.constant 0 : i32
    return %c0_i32, %c0_i32_0 : i32, i32
  }
  func.func @transform_1(%arg0: i32) -> (i32, i32) {
    %c0_i32 = arith.constant 0 : i32
    %c0_i32_0 = arith.constant 0 : i32
    %c0_i32_1 = arith.constant 0 : i32
    return %c0_i32, %c0_i32_0 : i32, i32
  }
  func.func @transform_2(%arg0: i32) -> (i32, i32) {
    %c0_i32 = arith.constant 0 : i32
    %c0_i32_0 = arith.constant 0 : i32
    %c0_i32_1 = arith.constant 0 : i32
    return %c0_i32, %c0_i32_0 : i32, i32
  }
  func.func @transform_3(%arg0: i32) -> (i32, i32) {
    %c0_i32 = arith.constant 0 : i32
    %c0_i32_0 = arith.constant 0 : i32
    return %c0_i32, %arg0 : i32, i32
  }
  func.func @transform_4(%arg0: i32) -> (i32, i32) {
    %c0_i32 = arith.constant 0 : i32
    %c0_i32_0 = arith.constant 0 : i32
    return %c0_i32, %arg0 : i32, i32
  }
  func.func @transform_5(%arg0: i32) -> (i32, i32) {
    %c0_i32 = arith.constant 0 : i32
    %c0_i32_0 = arith.constant 0 : i32
    return %arg0, %c0_i32 : i32, i32
  }
  func.func @transform_6(%arg0: i32) -> (i32, i32) {
    %c0_i32 = arith.constant 0 : i32
    %c0_i32_0 = arith.constant 0 : i32
    %c0_i32_1 = arith.constant 0 : i32
    return %c0_i32, %c0_i32_0 : i32, i32
  }
  func.func @transform_7(%arg0: i32) -> (i32, i32) {
    %c0_i32 = arith.constant 0 : i32
    %c0_i32_0 = arith.constant 0 : i32
    %c0_i32_1 = arith.constant 0 : i32
    return %c0_i32, %c0_i32_0 : i32, i32
  }
}

</mosaic_0001>

<bundles_post_ra>
// kernel: model6_forward.1
= control target key start
LH: loop header
LB: loop body
LE: loop exit
PB: predicated region body
PF: predicated region fallthrough
CT: control target
= control target key end

     0   :  { %12 = vsyncpa [#allocation5], 0  ;;  %s6115_s0 = inlined_call_operand.vmem [shape: bf16[64,360], index: 0, kind: input, shape index: {}]   ;;  %s6116_s1 = inlined_call_operand.hbm [shape: bf16[360,384], index: 1, kind: input, shape index: {}]   ;;  %s6117_s2 = inlined_call_operand.vmem [shape: f32[1,1280], index: 2, kind: input, shape index: {}]   ;;  %s6118_s3 = inlined_call_operand.vmem [shape: bf16[384,1024], index: 3, kind: input, shape index: {}]   ;;  %s6119_s4 = inlined_call_operand.vmem [shape: f32[1,1024], index: 4, kind: input, shape index: {}]   ;;  %s6120_s5 = inlined_call_operand.hbm [shape: bf16[1024,512], index: 5, kind: input, shape index: {}]   ;;  %s6121_s6 = inlined_call_operand.vmem [shape: bf16[512,128], index: 6, kind: input, shape index: {}]   ;;  %s6122_s7 = inlined_call_operand.vmem [shape: f32[32,1], index: 7, kind: output, shape index: {}]  }
   0x1   :  { %13 = vsyncpa [#allocation8], 0 }
   0x2   :  { %15 = vsyncpa [#allocation8 + $0x1], 0  ;;  %s5219_s24 = smov 0   ;;  %s5221_s25 = smov 0  }
   0x3   :  { %s5223_s26 = smov 0   ;;  %s5225_s27 = smov 0  }
   0x4 LB: > { %s5238_s28 = sadd.s32 4294967295, %s5168_s27   ;;  %s5241_s29 = sadd.s32 1, %s5168_s27   ;;  %s5168_s27 = sphi %s5225_s27, %s6135_s27   ;;  %s5164_s26 = sphi %s5223_s26, %s6134_s26   ;;  %s5160_s25 = sphi %s5221_s25, %s6133_s25   ;;  %s5156_s24 = sphi %s5219_s24, %s6132_s24  }
   0x5   : > { %s88_s30 = ssub.s32 %s5168_s27, %s5241_s29  ;;  %s91_s8 = sadd.s32 1, %s5164_s26 }
   0x6   : > { %p89_p0 = scmp.eq.s32.totalorder %s88_s30, 0  ;;  %p98_p1 = scmp.ne.s32.totalorder %s5164_s26, %s5160_s25 }
   0x7   : > { %p99_p2 = scmp.eq.s32.totalorder %s5168_s27, 0  ;;  %p156_p3 = scmp.ne.s32.totalorder %s5160_s25, %s5156_s24 }
   0x8   : > { %s5251_s9 = scalar_select %p89_p0, %s5164_s26, %s91_s8  }
   0x9   : > { %p5253_p4 = por %p99_p2, %p98_p1  ;;  %p6124_p5 = scmp.eq.s32.totalorder %s5238_s28, 0 }
   0xa   : > { %p3985_p6 = scmp.ge.s32.totalorder %s5168_s27, 1  ;;  %p209_p7 = scmp.lt.s32.totalorder %s5168_s27, 3 }
   0xb   : > { %p5262_p8 = por %p6124_p5, %p156_p3  ;;  %s5170_s13 = smov [#allocation4]  }
   0xc   : > { %p5267_p10 = pnand %p3985_p6, %p209_p7  ;;  %s224_s14 = sshll.u32 %s5170_s13, 4  ;;  %s225_s14 = int_to_ptr.vmem [resolvable:$true] %s224_s14 }
   0xd   : > { %s6126_s11 = scalar_select %p5262_p8, 1, 0 }
   0xe   : > { %p4533_p11 = pneg %p5267_p10  ;;  %s5089_s15 = scalar_lea.vmem %s225_s14, 8640 }
   0xf   : > { %p5090_p0 = scmp.ne.s32.totalorder %s225_s14, %s5089_s15  ;;  %p5097_p3 = scmp.lt.s32.totalorder %s225_s14, %s225_s14 }
  0x10   : > { %p4534_p12 = pnand %p4533_p11, %p6124_p5  ;;  %p5098_p8 = scmp.lt.s32.totalorder %s5089_s15, %s5089_s15 }
  0x12   : > { %p5080_p13 = pneg %p4534_p12  ;;  %p5099_p9 = por %p5098_p8, %p5097_p3 }
  0x14   : > { %p5092_p1 = pnand %p5090_p0, %p5080_p13 }
  0x16   : > { %p5093_p2 = pneg %p5092_p1 }
  0x18   : > { %p5100_p6 = pnand %p5099_p9, %p5093_p2 }
  0x1a   : > { %5103 = shalt.err (!%p5100_p6)
}
  0x1b   : > { %s5171_s16 = smov 192   ;;  %s5172_s17 = smov 12  }
  0x1c   : > { %4536 = dma.hbm_to_vmem [thread:$0]  (!%p4534_p12), %s6116_s1, 8640, %s225_s14, [#allocation5], %s5171_s16, %s5171_s16, %s5172_s17  }
  0x1d   : > { %p3987_p7 = scmp.ge.s32.totalorder %s5168_s27, 2 }
  0x1f   : > { %240 = sbr.rel (%p3987_p7) target bundleno = 113 (0x71), region = 32 }
  0x24   : > { %243 = sbr.rel (!%p5253_p4) target bundleno = 88 (0x58), region = 36  ;;  %s245_s20 = sand.u32 (%p5253_p4), 1, %s5164_s26  }
  0x25   : > { %s4369_s21 = sshll.u32 (%p5253_p4), %s5168_s27, 4  ;;  %s4525_s22 = smul.u32 (%p5253_p4), 768, %s245_s20 }
  0x26   : > { %s5286_s30 = scalar_lea.vmem (%p5253_p4), %s6118_s3, %s4369_s21 }
  0x27   : > { %v263_v0 = vld [vmem:[%s5286_s30] sm:$0xff] (%p5253_p4)  ;;  %v265_v1 = vld [vmem:[%s5286_s30 + $0x8] sm:$0xff] (%p5253_p4)  ;;  %s5294_s8 = scalar_lea.vmem (%p5253_p4), [#allocation6], %s4525_s22 }
  0x28   : > { %v267_v2 = vld [vmem:[%s5286_s30 + $0x20] sm:$0xff] (%p5253_p4)  ;;  %v269_v3 = vld [vmem:[%s5286_s30 + $0x28] sm:$0xff] (%p5253_p4)  ;;  %264 = vst [vmem:[%s5294_s8] sm:$0xff] (%p5253_p4), %v263_v0  ;;  %266 = vst [vmem:[%s5294_s8 + $0x8] sm:$0xff] (%p5253_p4), %v265_v1 }
  0x29   : > { %v271_v4 = vld [vmem:[%s5286_s30 + $0x40] sm:$0xff]  ;;  %v273_v5 = vld [vmem:[%s5286_s30 + $0x48] sm:$0xff]  ;;  %268 = vst [vmem:[%s5294_s8 + $0x10] sm:$0xff] %v267_v2  ;;  %270 = vst [vmem:[%s5294_s8 + $0x18] sm:$0xff] %v269_v3 }
  0x2a   : > { %272 = vst [vmem:[%s5294_s8 + $0x20] sm:$0xff] %v271_v4  ;;  %274 = vst [vmem:[%s5294_s8 + $0x28] sm:$0xff] %v273_v5  ;;  %v275_v6 = vld [vmem:[%s5286_s30 + $0x60] sm:$0xff]  ;;  %v277_v7 = vld [vmem:[%s5286_s30 + $0x68] sm:$0xff] }
  0x2b   : > { %v279_v8 = vld [vmem:[%s5286_s30 + $0x80] sm:$0xff]  ;;  %276 = vst [vmem:[%s5294_s8 + $0x30] sm:$0xff] %v275_v6  ;;  %278 = vst [vmem:[%s5294_s8 + $0x38] sm:$0xff] %v277_v7  ;;  %v281_v9 = vld [vmem:[%s5286_s30 + $0x88] sm:$0xff] }
  0x2c   : > { %280 = vst [vmem:[%s5294_s8 + $0x40] sm:$0xff] %v279_v8  ;;  %v283_v10 = vld [vmem:[%s5286_s30 + $0xa0] sm:$0xff]  ;;  %v285_v11 = vld [vmem:[%s5286_s30 + $0xa8] sm:$0xff]  ;;  %282 = vst [vmem:[%s5294_s8 + $0x48] sm:$0xff] %v281_v9 }
  0x2d   : > { %284 = vst [vmem:[%s5294_s8 + $0x50] sm:$0xff] %v283_v10  ;;  %286 = vst [vmem:[%s5294_s8 + $0x58] sm:$0xff] %v285_v11  ;;  %v287_v12 = vld [vmem:[%s5286_s30 + $0xc0] sm:$0xff]  ;;  %v289_v13 = vld [vmem:[%s5286_s30 + $0xc8] sm:$0xff] }
  0x2e   : > { %v291_v14 = vld [vmem:[%s5286_s30 + $0xe0] sm:$0xff]  ;;  %288 = vst [vmem:[%s5294_s8 + $0x60] sm:$0xff] %v287_v12  ;;  %290 = vst [vmem:[%s5294_s8 + $0x68] sm:$0xff] %v289_v13  ;;  %v293_v15 = vld [vmem:[%s5286_s30 + $0xe8] sm:$0xff] }
  0x2f   : > { %292 = vst [vmem:[%s5294_s8 + $0x70] sm:$0xff] %v291_v14  ;;  %v295_v16 = vld [vmem:[%s5286_s30 + $0x100] sm:$0xff]  ;;  %v297_v17 = vld [vmem:[%s5286_s30 + $0x108] sm:$0xff]  ;;  %294 = vst [vmem:[%s5294_s8 + $0x78] sm:$0xff] %v293_v15 }
  0x30   : > { %296 = vst [vmem:[%s5294_s8 + $0x80] sm:$0xff] %v295_v16  ;;  %298 = vst [vmem:[%s5294_s8 + $0x88] sm:$0xff] %v297_v17  ;;  %v299_v18 = vld [vmem:[%s5286_s30 + $0x120] sm:$0xff]  ;;  %v301_v19 = vld [vmem:[%s5286_s30 + $0x128] sm:$0xff] }
  0x31   : > { %v303_v20 = vld [vmem:[%s5286_s30 + $0x140] sm:$0xff]  ;;  %300 = vst [vmem:[%s5294_s8 + $0x90] sm:$0xff] %v299_v18  ;;  %302 = vst [vmem:[%s5294_s8 + $0x98] sm:$0xff] %v301_v19  ;;  %v305_v21 = vld [vmem:[%s5286_s30 + $0x148] sm:$0xff] }
  0x32   : > { %304 = vst [vmem:[%s5294_s8 + $0xa0] sm:$0xff] %v303_v20  ;;  %v307_v22 = vld [vmem:[%s5286_s30 + $0x160] sm:$0xff]  ;;  %v309_v23 = vld [vmem:[%s5286_s30 + $0x168] sm:$0xff]  ;;  %306 = vst [vmem:[%s5294_s8 + $0xa8] sm:$0xff] %v305_v21 }
  0x33   : > { %308 = vst [vmem:[%s5294_s8 + $0xb0] sm:$0xff] %v307_v22  ;;  %310 = vst [vmem:[%s5294_s8 + $0xb8] sm:$0xff] %v309_v23  ;;  %v311_v24 = vld [vmem:[%s5286_s30 + $0x180] sm:$0xff]  ;;  %v313_v25 = vld [vmem:[%s5286_s30 + $0x188] sm:$0xff] }
  0x34   : > { %v315_v26 = vld [vmem:[%s5286_s30 + $0x1a0] sm:$0xff]  ;;  %312 = vst [vmem:[%s5294_s8 + $0xc0] sm:$0xff] %v311_v24  ;;  %314 = vst [vmem:[%s5294_s8 + $0xc8] sm:$0xff] %v313_v25  ;;  %v317_v27 = vld [vmem:[%s5286_s30 + $0x1a8] sm:$0xff] }
  0x35   : > { %316 = vst [vmem:[%s5294_s8 + $0xd0] sm:$0xff] %v315_v26  ;;  %v319_v28 = vld [vmem:[%s5286_s30 + $0x1c0] sm:$0xff]  ;;  %v321_v29 = vld [vmem:[%s5286_s30 + $0x1c8] sm:$0xff]  ;;  %318 = vst [vmem:[%s5294_s8 + $0xd8] sm:$0xff] %v317_v27 }
  0x36   : > { %320 = vst [vmem:[%s5294_s8 + $0xe0] sm:$0xff] %v319_v28  ;;  %322 = vst [vmem:[%s5294_s8 + $0xe8] sm:$0xff] %v321_v29  ;;  %v323_v30 = vld [vmem:[%s5286_s30 + $0x1e0] sm:$0xff]  ;;  %v325_v31 = vld [vmem:[%s5286_s30 + $0x1e8] sm:$0xff] }
  0x37   : > { %v327_v32 = vld [vmem:[%s5286_s30 + $0x200] sm:$0xff]  ;;  %324 = vst [vmem:[%s5294_s8 + $0xf0] sm:$0xff] %v323_v30  ;;  %326 = vst [vmem:[%s5294_s8 + $0xf8] sm:$0xff] %v325_v31  ;;  %v329_v33 = vld [vmem:[%s5286_s30 + $0x208] sm:$0xff] }
  0x38   : > { %328 = vst [vmem:[%s5294_s8 + $0x100] sm:$0xff] %v327_v32  ;;  %v331_v34 = vld [vmem:[%s5286_s30 + $0x220] sm:$0xff]  ;;  %v333_v35 = vld [vmem:[%s5286_s30 + $0x228] sm:$0xff]  ;;  %330 = vst [vmem:[%s5294_s8 + $0x108] sm:$0xff] %v329_v33 }
  0x39   : > { %332 = vst [vmem:[%s5294_s8 + $0x110] sm:$0xff] %v331_v34  ;;  %334 = vst [vmem:[%s5294_s8 + $0x118] sm:$0xff] %v333_v35  ;;  %v335_v36 = vld [vmem:[%s5286_s30 + $0x240] sm:$0xff]  ;;  %v337_v37 = vld [vmem:[%s5286_s30 + $0x248] sm:$0xff] }
  0x3a   : > { %v339_v38 = vld [vmem:[%s5286_s30 + $0x260] sm:$0xff]  ;;  %336 = vst [vmem:[%s5294_s8 + $0x120] sm:$0xff] %v335_v36  ;;  %338 = vst [vmem:[%s5294_s8 + $0x128] sm:$0xff] %v337_v37  ;;  %v341_v39 = vld [vmem:[%s5286_s30 + $0x268] sm:$0xff] }
  0x3b   : > { %340 = vst [vmem:[%s5294_s8 + $0x130] sm:$0xff] %v339_v38  ;;  %v343_v40 = vld [vmem:[%s5286_s30 + $0x280] sm:$0xff]  ;;  %v345_v41 = vld [vmem:[%s5286_s30 + $0x288] sm:$0xff]  ;;  %342 = vst [vmem:[%s5294_s8 + $0x138] sm:$0xff] %v341_v39 }
  0x3c   : > { %344 = vst [vmem:[%s5294_s8 + $0x140] sm:$0xff] %v343_v40  ;;  %346 = vst [vmem:[%s5294_s8 + $0x148] sm:$0xff] %v345_v41  ;;  %v347_v42 = vld [vmem:[%s5286_s30 + $0x2a0] sm:$0xff]  ;;  %v349_v43 = vld [vmem:[%s5286_s30 + $0x2a8] sm:$0xff] }
  0x3d   : > { %v351_v44 = vld [vmem:[%s5286_s30 + $0x2c0] sm:$0xff]  ;;  %348 = vst [vmem:[%s5294_s8 + $0x150] sm:$0xff] %v347_v42  ;;  %350 = vst [vmem:[%s5294_s8 + $0x158] sm:$0xff] %v349_v43  ;;  %v353_v45 = vld [vmem:[%s5286_s30 + $0x2c8] sm:$0xff] }
  0x3e   : > { %352 = vst [vmem:[%s5294_s8 + $0x160] sm:$0xff] %v351_v44  ;;  %v355_v46 = vld [vmem:[%s5286_s30 + $0x2e0] sm:$0xff]  ;;  %v357_v47 = vld [vmem:[%s5286_s30 + $0x2e8] sm:$0xff]  ;;  %354 = vst [vmem:[%s5294_s8 + $0x168] sm:$0xff] %v353_v45 }
  0x3f   : > { %356 = vst [vmem:[%s5294_s8 + $0x170] sm:$0xff] %v355_v46  ;;  %358 = vst [vmem:[%s5294_s8 + $0x178] sm:$0xff] %v357_v47  ;;  %v359_v48 = vld [vmem:[%s5286_s30 + $0x300] sm:$0xff]  ;;  %v361_v49 = vld [vmem:[%s5286_s30 + $0x308] sm:$0xff] }
  0x40   : > { %v363_v50 = vld [vmem:[%s5286_s30 + $0x320] sm:$0xff]  ;;  %360 = vst [vmem:[%s5294_s8 + $0x180] sm:$0xff] %v359_v48  ;;  %362 = vst [vmem:[%s5294_s8 + $0x188] sm:$0xff] %v361_v49  ;;  %v365_v51 = vld [vmem:[%s5286_s30 + $0x328] sm:$0xff] }
  0x41   : > { %364 = vst [vmem:[%s5294_s8 + $0x190] sm:$0xff] %v363_v50  ;;  %v367_v52 = vld [vmem:[%s5286_s30 + $0x340] sm:$0xff]  ;;  %v369_v53 = vld [vmem:[%s5286_s30 + $0x348] sm:$0xff]  ;;  %366 = vst [vmem:[%s5294_s8 + $0x198] sm:$0xff] %v365_v51 }
  0x42   : > { %368 = vst [vmem:[%s5294_s8 + $0x1a0] sm:$0xff] %v367_v52  ;;  %370 = vst [vmem:[%s5294_s8 + $0x1a8] sm:$0xff] %v369_v53  ;;  %v371_v54 = vld [vmem:[%s5286_s30 + $0x360] sm:$0xff]  ;;  %v373_v55 = vld [vmem:[%s5286_s30 + $0x368] sm:$0xff] }
  0x43   : > { %v375_v56 = vld [vmem:[%s5286_s30 + $0x380] sm:$0xff]  ;;  %372 = vst [vmem:[%s5294_s8 + $0x1b0] sm:$0xff] %v371_v54  ;;  %374 = vst [vmem:[%s5294_s8 + $0x1b8] sm:$0xff] %v373_v55  ;;  %v377_v57 = vld [vmem:[%s5286_s30 + $0x388] sm:$0xff] }
  0x44   : > { %376 = vst [vmem:[%s5294_s8 + $0x1c0] sm:$0xff] %v375_v56  ;;  %v379_v58 = vld [vmem:[%s5286_s30 + $0x3a0] sm:$0xff]  ;;  %v381_v59 = vld [vmem:[%s5286_s30 + $0x3a8] sm:$0xff]  ;;  %378 = vst [vmem:[%s5294_s8 + $0x1c8] sm:$0xff] %v377_v57 }
  0x45   : > { %380 = vst [vmem:[%s5294_s8 + $0x1d0] sm:$0xff] %v379_v58  ;;  %382 = vst [vmem:[%s5294_s8 + $0x1d8] sm:$0xff] %v381_v59  ;;  %v383_v60 = vld [vmem:[%s5286_s30 + $0x3c0] sm:$0xff]  ;;  %v385_v61 = vld [vmem:[%s5286_s30 + $0x3c8] sm:$0xff] }
  0x46   : > { %v387_v62 = vld [vmem:[%s5286_s30 + $0x3e0] sm:$0xff]  ;;  %384 = vst [vmem:[%s5294_s8 + $0x1e0] sm:$0xff] %v383_v60  ;;  %386 = vst [vmem:[%s5294_s8 + $0x1e8] sm:$0xff] %v385_v61  ;;  %v389_v63 = vld [vmem:[%s5286_s30 + $0x3e8] sm:$0xff] }
  0x47   : > { %388 = vst [vmem:[%s5294_s8 + $0x1f0] sm:$0xff] %v387_v62  ;;  %v391_v0 = vld [vmem:[%s5286_s30 + $0x400] sm:$0xff]  ;;  %v393_v1 = vld [vmem:[%s5286_s30 + $0x408] sm:$0xff]  ;;  %390 = vst [vmem:[%s5294_s8 + $0x1f8] sm:$0xff] %v389_v63 }
  0x48   : > { %392 = vst [vmem:[%s5294_s8 + $0x200] sm:$0xff] %v391_v0  ;;  %394 = vst [vmem:[%s5294_s8 + $0x208] sm:$0xff] %v393_v1  ;;  %v395_v2 = vld [vmem:[%s5286_s30 + $0x420] sm:$0xff]  ;;  %v397_v3 = vld [vmem:[%s5286_s30 + $0x428] sm:$0xff] }
  0x49   : > { %v399_v4 = vld [vmem:[%s5286_s30 + $0x440] sm:$0xff]  ;;  %396 = vst [vmem:[%s5294_s8 + $0x210] sm:$0xff] %v395_v2  ;;  %398 = vst [vmem:[%s5294_s8 + $0x218] sm:$0xff] %v397_v3  ;;  %v401_v5 = vld [vmem:[%s5286_s30 + $0x448] sm:$0xff] }
  0x4a   : > { %400 = vst [vmem:[%s5294_s8 + $0x220] sm:$0xff] %v399_v4  ;;  %v403_v6 = vld [vmem:[%s5286_s30 + $0x460] sm:$0xff]  ;;  %v405_v7 = vld [vmem:[%s5286_s30 + $0x468] sm:$0xff]  ;;  %402 = vst [vmem:[%s5294_s8 + $0x228] sm:$0xff] %v401_v5 }
  0x4b   : > { %404 = vst [vmem:[%s5294_s8 + $0x230] sm:$0xff] %v403_v6  ;;  %406 = vst [vmem:[%s5294_s8 + $0x238] sm:$0xff] %v405_v7  ;;  %v407_v8 = vld [vmem:[%s5286_s30 + $0x480] sm:$0xff]  ;;  %v409_v9 = vld [vmem:[%s5286_s30 + $0x488] sm:$0xff] }
  0x4c   : > { %v411_v10 = vld [vmem:[%s5286_s30 + $0x4a0] sm:$0xff]  ;;  %408 = vst [vmem:[%s5294_s8 + $0x240] sm:$0xff] %v407_v8  ;;  %410 = vst [vmem:[%s5294_s8 + $0x248] sm:$0xff] %v409_v9  ;;  %v413_v11 = vld [vmem:[%s5286_s30 + $0x4a8] sm:$0xff] }
  0x4d   : > { %412 = vst [vmem:[%s5294_s8 + $0x250] sm:$0xff] %v411_v10  ;;  %v415_v12 = vld [vmem:[%s5286_s30 + $0x4c0] sm:$0xff]  ;;  %v417_v13 = vld [vmem:[%s5286_s30 + $0x4c8] sm:$0xff]  ;;  %414 = vst [vmem:[%s5294_s8 + $0x258] sm:$0xff] %v413_v11 }
  0x4e   : > { %416 = vst [vmem:[%s5294_s8 + $0x260] sm:$0xff] %v415_v12  ;;  %418 = vst [vmem:[%s5294_s8 + $0x268] sm:$0xff] %v417_v13  ;;  %v419_v14 = vld [vmem:[%s5286_s30 + $0x4e0] sm:$0xff]  ;;  %v421_v15 = vld [vmem:[%s5286_s30 + $0x4e8] sm:$0xff] }
  0x4f   : > { %v423_v16 = vld [vmem:[%s5286_s30 + $0x500] sm:$0xff]  ;;  %420 = vst [vmem:[%s5294_s8 + $0x270] sm:$0xff] %v419_v14  ;;  %422 = vst [vmem:[%s5294_s8 + $0x278] sm:$0xff] %v421_v15  ;;  %v425_v17 = vld [vmem:[%s5286_s30 + $0x508] sm:$0xff] }
  0x50   : > { %424 = vst [vmem:[%s5294_s8 + $0x280] sm:$0xff] %v423_v16  ;;  %v427_v18 = vld [vmem:[%s5286_s30 + $0x520] sm:$0xff]  ;;  %v429_v19 = vld [vmem:[%s5286_s30 + $0x528] sm:$0xff]  ;;  %426 = vst [vmem:[%s5294_s8 + $0x288] sm:$0xff] %v425_v17 }
  0x51   : > { %428 = vst [vmem:[%s5294_s8 + $0x290] sm:$0xff] %v427_v18  ;;  %430 = vst [vmem:[%s5294_s8 + $0x298] sm:$0xff] %v429_v19  ;;  %v431_v20 = vld [vmem:[%s5286_s30 + $0x540] sm:$0xff]  ;;  %v433_v21 = vld [vmem:[%s5286_s30 + $0x548] sm:$0xff] }
  0x52   : > { %v435_v22 = vld [vmem:[%s5286_s30 + $0x560] sm:$0xff]  ;;  %432 = vst [vmem:[%s5294_s8 + $0x2a0] sm:$0xff] %v431_v20  ;;  %434 = vst [vmem:[%s5294_s8 + $0x2a8] sm:$0xff] %v433_v21  ;;  %v437_v23 = vld [vmem:[%s5286_s30 + $0x568] sm:$0xff] }
  0x53   : > { %436 = vst [vmem:[%s5294_s8 + $0x2b0] sm:$0xff] %v435_v22  ;;  %v439_v24 = vld [vmem:[%s5286_s30 + $0x580] sm:$0xff]  ;;  %v441_v25 = vld [vmem:[%s5286_s30 + $0x588] sm:$0xff]  ;;  %438 = vst [vmem:[%s5294_s8 + $0x2b8] sm:$0xff] %v437_v23 }
  0x54   : > { %440 = vst [vmem:[%s5294_s8 + $0x2c0] sm:$0xff] %v439_v24  ;;  %442 = vst [vmem:[%s5294_s8 + $0x2c8] sm:$0xff] %v441_v25  ;;  %v443_v26 = vld [vmem:[%s5286_s30 + $0x5a0] sm:$0xff]  ;;  %v445_v27 = vld [vmem:[%s5286_s30 + $0x5a8] sm:$0xff] }
  0x55   : > { %v447_v28 = vld [vmem:[%s5286_s30 + $0x5c0] sm:$0xff]  ;;  %444 = vst [vmem:[%s5294_s8 + $0x2d0] sm:$0xff] %v443_v26  ;;  %446 = vst [vmem:[%s5294_s8 + $0x2d8] sm:$0xff] %v445_v27  ;;  %v449_v29 = vld [vmem:[%s5286_s30 + $0x5c8] sm:$0xff] }
  0x56   : > { %448 = vst [vmem:[%s5294_s8 + $0x2e0] sm:$0xff] %v447_v28  ;;  %v451_v30 = vld [vmem:[%s5286_s30 + $0x5e0] sm:$0xff]  ;;  %v453_v31 = vld [vmem:[%s5286_s30 + $0x5e8] sm:$0xff]  ;;  %450 = vst [vmem:[%s5294_s8 + $0x2e8] sm:$0xff] %v449_v29 }
  0x57   : > { %452 = vst [vmem:[%s5294_s8 + $0x2f0] sm:$0xff] %v451_v30  ;;  %454 = vst [vmem:[%s5294_s8 + $0x2f8] sm:$0xff] %v453_v31 }
  0x58 PF: > { %s469_s13 = sand.u32 1, %s5164_s26   ;;  %s4371_s14 = sshll.u32 %s5168_s27, 14 }
  0x59   : > { %s3990_s15 = sshll.u32 %s469_s13, 10  ;;  %s5487_s18 = scalar_lea.hbm %s6120_s5, %s4371_s14 }
  0x5a   : > { %s473_s19 = scalar_lea.vmem [#allocation7], %s3990_s15  ;;  %s5491_s21 = scalar_lea.sflag [#allocation8], %s469_s13 }
  0x5b   : > { %s481_s20 = sshll.u32 %s473_s19, 4  ;;  %s5104_s22 = scalar_lea.hbm %s5487_s18, 16384  ;;  %s5489_s20 = int_to_ptr.vmem [resolvable:$true] %s481_s20 }
  0x5c   : > { %p5105_p8 = scmp.ne.s32.totalorder %s5487_s18, %s5104_s22  ;;  %s5108_s24 = scalar_lea.hbm %s6120_s5, 32768 }
  0x5d   : > { %p5109_p12 = scmp.lt.s32.totalorder %s5487_s18, %s6120_s5  ;;  %p5110_p13 = scmp.lt.s32.totalorder %s5108_s24, %s5104_s22 }
  0x5e   : > { %p5106_p9 = pnand %p5105_p8, %p5253_p4 }
  0x5f   : > { %p5111_p0 = por %p5110_p13, %p5109_p12 }
  0x60   : > { %p5107_p11 = pneg %p5106_p9 }
  0x62   : > { %p5112_p1 = pnand %p5111_p0, %p5107_p11 }
  0x64   : > { %5115 = shalt.err (!%p5112_p1)
}
  0x65   : > { %s5116_s13 = scalar_lea.vmem %s5489_s20, 16384  ;;  %s5173_s14 = smov [#allocation7]  }
  0x66   : > { %p5117_p2 = scmp.ne.s32.totalorder %s5489_s20, %s5116_s13  ;;  %s5120_s15 = sshll.u32 %s5173_s14, 4  ;;  %s5121_s15 = int_to_ptr.vmem [resolvable:$false] %s5120_s15 }
  0x67   : > { %s5122_s16 = scalar_lea.vmem %s5121_s15, 32768  ;;  %p5123_p7 = scmp.lt.s32.totalorder %s5489_s20, %s5121_s15 }
  0x68   : > { %p5118_p3 = pnand %p5117_p2, %p5253_p4  ;;  %p5124_p8 = scmp.lt.s32.totalorder %s5122_s16, %s5116_s13 }
  0x6a   : > { %p5119_p6 = pneg %p5118_p3  ;;  %p5125_p9 = por %p5124_p8, %p5123_p7 }
  0x6c   : > { %p5126_p5 = pnand %p5125_p9, %p5119_p6 }
  0x6e   : > { %5129 = shalt.err (!%p5126_p5)
}
  0x6f   : > { %s5174_s17 = smov 256   ;;  %s5175_s19 = smov 16  }
  0x70   : > { %4529 = dma.hbm_to_vmem [thread:$0]  (%p5253_p4), %s5487_s18, 16384, %s5489_s20, %s5491_s21, %s5174_s17, %s5174_s17, %s5175_s19  }
  0x71 PF: > { %493 = sbr.rel (%p5267_p10) target bundleno = 1442 (0x5a2), region = 67  ;;  %p6128_p11 = scmp.eq.s32.totalorder (!%p5267_p10), %s5238_s28, 0 }
  0x76   : > { %5147 = dma.done.wait (%p6128_p11), [#allocation5], 8640   ;;  %p6129_p12 = pmov %p6128_p11 }
  0x77   : > { %s500_s22 = sand.u32 1, %s5160_s25   ;;  %p6130_p4 = scmp.ne.s32.totalorder %s6126_s11, 0 }
  0x78   : > { %5149 = vsyncadd (%p6129_p12), [#allocation5], 4294958656  ;;  %s4526_s27 = smul.u32 768, %s500_s22  ;;  %s3996_s23 = sshll.u32 %s500_s22, 10 }
  0x79   : > { %s507_s30 = scalar_lea.sflag [#allocation8], %s500_s22  ;;  %s5523_s10 = scalar_lea.vmem [#allocation7], %s3996_s23 }
  0x7a   : > { %s5521_s24 = scalar_lea.vmem [#allocation6], %s4526_s27 }
  0x7b   : > { %5151 = dma.done.wait (%p6130_p4), %s507_s30, 16384  }
  0x7c   : > { %5153 = vsyncadd (%p6130_p4), %s507_s30, 4294950912  ;;  %s3997_s12 = sshll.u32 %s5238_s28, 2  ;;  %p6131_p10 = scmp.ne.s32.totalorder %s5238_s28, 0 }
  0x7d   : > { %p546_p5 = scmp.lt.s32.totalorder %s3997_s12, 7 }
  0x7e   : > { %555 = sbr.rel (%p6131_p10) target bundleno = 436 (0x1b4), region = 83 }
  0x7f   : > { %s6137_s12 = smov (!%p546_p5, %s3997_s12), 7 }
  0x80   : > { %s548_s21 = scalar_lea.vmem %s6119_s4, %s6137_s12 }
  0x83   : > { %v4579_v32 = vld [vmem:[#allocation4 + $0xac] ss:$12 sps:$4 sm:$0xff]   ;;  %v660_v33 = vld [vmem:[#allocation4 + $0x210] sm:$0xff]  ;;  %vm1112_vm0 = vcmask 1043456   ;;  %v5176_v35 = vmov 0   ;;  %vm1099_vm1 = vcmask 850944  }
  0x84   : > { %v4582_v34 = vld [vmem:[#allocation4 + $0xa8] ss:$12 sps:$4 sm:$0xff]   ;;  %1227 = vmatprep.mubr.bf16.mxu1 %v5176_v35  ;;  %1122 = vmatprep.subr.bf16.mxu0 %v4579_v32  ;;  %v4078_v36 = vcombine.high %v660_v33, %v660_v33  ;;  %v4077_v37 = vcombine.low %v660_v33, %v660_v33  ;;  %v4588_v40 = vld [vmem:[#allocation4 + $0x90] ss:$12 sps:$4 sm:$0xff]   ;;  %v4589_v42 = vld [vmem:[#allocation4 + $0x1f8] ss:$12 sps:$4 sm:$0xff]  }
  0x85   : > { %v4584_v38 = vld [vmem:[#allocation4 + $0x94] ss:$12 sps:$4 sm:$0xff]   ;;  %1123 = vmatpush1.bf16.msra.mxu0 %v4582_v34  ;;  %v4586_v39 = vld [vmem:[#allocation4 + $0x1fc] ss:$12 sps:$4 sm:$0xff]   ;;  %v4592_v44 = vld [vmem:[#allocation4 + $0x1e4] ss:$12 sps:$4 sm:$0xff]  }
  0x86   : > { %4080 = vmatprep.subr.msk.bf16.mxu1 %vm1112_vm0, %v4078_v36  ;;  %v1114_v41 = vsel %vm1112_vm0, %v4077_v37, 0  ;;  %1124 = vmatprep.subr.bf16.mxu0 %v4584_v38  ;;  %v4590_v43 = vld [vmem:[#allocation4 + $0x7c] ss:$12 sps:$4 sm:$0xff]   ;;  %v4594_v45 = vld [vmem:[#allocation4 + $0x78] ss:$12 sps:$4 sm:$0xff]  }
  0x87   : > { %1198 = vmatpush1.bf16.msra.mxu1 %v1114_v41  ;;  %v4596_v46 = vld [vmem:[#allocation4 + $0x64] ss:$12 sps:$4 sm:$0xff]   ;;  %v4595_v47 = vld [vmem:[#allocation4 + $0x1e0] ss:$12 sps:$4 sm:$0xff]   ;;  %v4601_v51 = vld [vmem:[#allocation4 + $0x1c8] ss:$12 sps:$4 sm:$0xff]  }
  0x88   : > { %1199 = vmatprep.subr.bf16.mxu1 %v4586_v39  ;;  %v4598_v48 = vld [vmem:[#allocation4 + $0x1cc] ss:$12 sps:$4 sm:$0xff]   ;;  %v4604_v52 = vld [vmem:[#allocation4 + $0x1b4] ss:$12 sps:$4 sm:$0xff]   ;;  %v4607_v55 = vld [vmem:[#allocation4 + $0x1b0] ss:$12 sps:$4 sm:$0xff]  }
  0x89   : > { %1125 = vmatpush1.bf16.msra.mxu0 %v4588_v40  ;;  %v4600_v49 = vld [vmem:[#allocation4 + $0x60] ss:$12 sps:$4 sm:$0xff]   ;;  %v4606_v53 = vld [vmem:[#allocation4 + $0x48] ss:$12 sps:$4 sm:$0xff]   ;;  %v4612_v57 = vld [vmem:[#allocation4 + $0x30] ss:$12 sps:$4 sm:$0xff]  }
  0x8a   : > { %1126 = vmatprep.subr.bf16.mxu0 %v4590_v43  ;;  %v4602_v50 = vld [vmem:[#allocation4 + $0x4c] ss:$12 sps:$4 sm:$0xff]   ;;  %v4608_v54 = vld [vmem:[#allocation4 + $0x34] ss:$12 sps:$4 sm:$0xff]   ;;  %v4610_v56 = vld [vmem:[#allocation4 + $0x19c] ss:$12 sps:$4 sm:$0xff]  }
  0x8b   : > { %1200 = vmatpush1.bf16.msra.mxu1 %v4589_v42  ;;  %v4614_v58 = vld [vmem:[#allocation4 + $0x1c] ss:$12 sps:$4 sm:$0xff]   ;;  %v4613_v59 = vld [vmem:[#allocation4 + $0x198] ss:$12 sps:$4 sm:$0xff]   ;;  %v4619_v63 = vld [vmem:[#allocation4 + $0x180] ss:$12 sps:$4 sm:$0xff]  }
  0x8c   : > { %1201 = vmatprep.subr.bf16.mxu1 %v4592_v44  ;;  %v4616_v60 = vld [vmem:[#allocation4 + $0x184] ss:$12 sps:$4 sm:$0xff]   ;;  %v4624_v1 = vld [vmem:[#allocation4] ss:$12 sps:$4 sm:$0xff]   ;;  %v4629_v6 = vld [vmem:[#allocation4 + $0x168] ss:$12 sps:$4 sm:$0xff]  }
  0x8d   : > { %1127 = vmatpush1.bf16.msra.mxu0 %v4594_v45  ;;  %v4618_v61 = vld [vmem:[#allocation4 + $0x18] ss:$12 sps:$4 sm:$0xff]   ;;  %v4623_v0 = vld [vmem:[#allocation4 + $0x170] ss:$12 sps:$4 sm:$0xff]   ;;  %v4631_v7 = vld [vmem:[#allocation4 + $0x154] ss:$12 sps:$4 sm:$0xff]  }
  0x8e   : > { %1128 = vmatprep.subr.bf16.mxu0 %v4596_v46  ;;  %v4620_v62 = vld [vmem:[#allocation4 + $0x4] ss:$12 sps:$4 sm:$0xff]   ;;  %v4626_v3 = vld [vmem:[#allocation4 + $0x16c] ss:$12 sps:$4 sm:$0xff]   ;;  %v4637_v12 = vld [vmem:[#allocation4 + $0x13c] ss:$12 sps:$4 sm:$0xff]  }
  0x8f   : > { %1202 = vmatpush1.bf16.msra.mxu1 %v4595_v47  ;;  %v5544_v2 = vld [vmem:[%s6115_s0 + $0x8] ss:$12 sps:$4 sm:$0xff]   ;;  %v4625_v4 = vld [vmem:[#allocation4 + $0xb0] ss:$12 sps:$4 sm:$0xff]   ;;  %v4634_v10 = vld [vmem:[#allocation4 + $0x140] ss:$12 sps:$4 sm:$0xff]  }
  0x90   : > { %1203 = vmatprep.subr.bf16.mxu1 %v4598_v48  ;;  %v4628_v5 = vld [vmem:[#allocation4 + $0x158] ss:$12 sps:$4 sm:$0xff]   ;;  %v5552_v9 = vld [vmem:[%s6115_s0 + $0x20] ss:$12 sps:$4 sm:$0xff]   ;;  %v4636_v13 = vld [vmem:[#allocation4 + $0x80] ss:$12 sps:$4 sm:$0xff]  }
  0x91   : > { %1129 = vmatpush1.bf16.msra.mxu0 %v4600_v49  ;;  %v4630_v8 = vld [vmem:[#allocation4 + $0x98] ss:$12 sps:$4 sm:$0xff]   ;;  %v4635_v11 = vld [vmem:[#allocation4 + $0x150] ss:$12 sps:$4 sm:$0xff]   ;;  %v4639_v14 = vld [vmem:[#allocation4 + $0x128] ss:$12 sps:$4 sm:$0xff]  }
  0x92   : > { %1130 = vmatprep.subr.bf16.mxu0 %v4602_v50  ;;  %v4640_v15 = vld [vmem:[#allocation4 + $0x138] ss:$12 sps:$4 sm:$0xff]   ;;  %v4641_v17 = vld [vmem:[#allocation4 + $0x68] ss:$12 sps:$4 sm:$0xff]   ;;  %v4645_v18 = vld [vmem:[#allocation4 + $0x110] ss:$12 sps:$4 sm:$0xff]  }
  0x93   : > { %1204 = vmatpush1.bf16.msra.mxu1 %v4601_v51  ;;  %v4642_v16 = vld [vmem:[#allocation4 + $0x124] ss:$12 sps:$4 sm:$0xff]   ;;  %v5560_v19 = vld [vmem:[%s6115_s0 + $0x38] ss:$12 sps:$4 sm:$0xff]   ;;  %v4646_v20 = vld [vmem:[#allocation4 + $0x120] ss:$12 sps:$4 sm:$0xff]  }
  0x94   : > { %1205 = vmatprep.subr.bf16.mxu1 %v4604_v52  ;;  %v4648_v21 = vld [vmem:[#allocation4 + $0x10c] ss:$12 sps:$4 sm:$0xff]   ;;  %v4647_v22 = vld [vmem:[#allocation4 + $0x50] ss:$12 sps:$4 sm:$0xff]   ;;  %v4651_v24 = vld [vmem:[#allocation4 + $0x108] ss:$12 sps:$4 sm:$0xff]  }
  0x95   : > { %1131 = vmatpush1.bf16.msra.mxu0 %v4606_v53  ;;  %v4650_v23 = vld [vmem:[#allocation4 + $0xf8] ss:$12 sps:$4 sm:$0xff]   ;;  %v4653_v25 = vld [vmem:[#allocation4 + $0xf4] ss:$12 sps:$4 sm:$0xff]   ;;  %v4657_v30 = vld [vmem:[#allocation4 + $0xf0] ss:$12 sps:$4 sm:$0xff]  }
  0x96   : > { %1132 = vmatprep.subr.bf16.mxu0 %v4608_v54  ;;  %v4652_v26 = vld [vmem:[#allocation4 + $0x38] ss:$12 sps:$4 sm:$0xff]   ;;  %v4666_v27 = vld [vmem:[%s6115_s0 + $0x4] ss:$12 sps:$4 sm:$0xff]   ;;  %v4659_v32 = vld [vmem:[#allocation4 + $0xdc] ss:$12 sps:$4 sm:$0xff]  }
  0x97   : > { %1206 = vmatpush1.bf16.msra.mxu1 %v4607_v55  ;;  %v5571_v28 = vld [vmem:[%s6115_s0 + $0x50] ss:$12 sps:$4 sm:$0xff]   ;;  %1154 = vmatprep.mubr.bf16.mxu0 %v4666_v27  ;;  %v4661_v33 = vld [vmem:[#allocation4 + $0xc8] ss:$12 sps:$4 sm:$0xff]   ;;  %v4662_v34 = vld [vmem:[#allocation4 + $0xd8] ss:$12 sps:$4 sm:$0xff]  }
  0x98   : > { %1207 = vmatprep.subr.bf16.mxu1 %v4610_v56  ;;  %v4656_v29 = vld [vmem:[#allocation4 + $0xe0] ss:$12 sps:$4 sm:$0xff]   ;;  %v4663_v36 = vld [vmem:[#allocation4 + $0x8] ss:$12 sps:$4 sm:$0xff]   ;;  %v4670_v37 = vld [vmem:[#allocation4 + $0x218] ss:$0 sps:$4 sm:$0xff]  }
  0x99   : > { %1133 = vmatpush1.bf16.msra.mxu0 %v4612_v57  ;;  %v4658_v31 = vld [vmem:[#allocation4 + $0x20] ss:$12 sps:$4 sm:$0xff]   ;;  %v4664_v39 = vld [vmem:[%s6115_s0] ss:$12 sps:$4 sm:$0xff]   ;;  %v1120_v41 = vsel %vm1112_vm0, %v4670_v37, 0  ;;  %v5177_v53 = vmov 0.0  }
  0x9a   : > { %1134 = vmatprep.subr.bf16.mxu0 %v4614_v58  ;;  %v4669_v38 = vld [vmem:[#allocation4 + $0xc0] ss:$12 sps:$4 sm:$0xff]   ;;  %v4675_v43 = vld [vmem:[#allocation4 + $0x1e8] ss:$12 sps:$4 sm:$0xff]   ;;  %v4676_v45 = vld [vmem:[%s6115_s0 + $0x34] ss:$12 sps:$4 sm:$0xff]  }
  0x9b   : > { %1208 = vmatpush1.bf16.msra.mxu1 %v4613_v59  ;;  %v4671_v40 = vld [vmem:[%s6115_s0 + $0x1c] ss:$12 sps:$4 sm:$0xff]   ;;  %v4673_v44 = vld [vmem:[%s6115_s0 + $0x18] ss:$12 sps:$4 sm:$0xff]   ;;  %v4679_v46 = vld [vmem:[#allocation4 + $0x1d0] ss:$12 sps:$4 sm:$0xff]  }
  0x9c   : > { %1209 = vmatprep.subr.bf16.mxu1 %v4616_v60  ;;  %v4674_v42 = vld [vmem:[#allocation4 + $0x200] ss:$12 sps:$4 sm:$0xff]   ;;  %v4680_v47 = vld [vmem:[#allocation4 + $0x1b8] ss:$12 sps:$4 sm:$0xff]   ;;  %v4681_v49 = vld [vmem:[%s6115_s0 + $0x4c] ss:$12 sps:$4 sm:$0xff]  }
  0x9d   : > { %1135 = vmatpush1.bf16.msra.mxu0 %v4618_v61  ;;  %v4678_v48 = vld [vmem:[%s6115_s0 + $0x30] ss:$12 sps:$4 sm:$0xff]   ;;  %v4685_v51 = vld [vmem:[#allocation4 + $0x188] ss:$12 sps:$4 sm:$0xff]   ;;  %v4683_v52 = vld [vmem:[%s6115_s0 + $0x48] ss:$12 sps:$4 sm:$0xff]  }
  0x9e   : > { %1136 = vmatprep.subr.bf16.mxu0 %v4620_v62  ;;  %v4684_v50 = vld [vmem:[#allocation4 + $0x1a0] ss:$12 sps:$4 sm:$0xff]   ;;  %1482 = vst [vmem:[#allocation3 + $0x30] sm:$0xff] %v5177_v53  ;;  %1483 = vst [vmem:[#allocation3] sm:$0xff] %v5177_v53 }
  0x9f   : > { %1210 = vmatpush1.bf16.msra.mxu1 %v4619_v63  ;;  %1484 = vst [vmem:[#allocation3 + $0x58] sm:$0xff] %v5177_v53  ;;  %1485 = vst [vmem:[#allocation3 + $0x18] sm:$0xff] %v5177_v53 }
  0xa0   : > { %4380 = vmatprep.subr.bf16.mxu1 %v4623_v0  ;;  %1486 = vst [vmem:[#allocation3 + $0x50] sm:$0xff] %v5177_v53  ;;  %1487 = vst [vmem:[#allocation3 + $0x68] sm:$0xff] %v5177_v53 }
  0xa1   : > { %1137 = vmatpush1.bf16.msra.mxu0 %v4624_v1  ;;  %1488 = vst [vmem:[#allocation3 + $0x8] sm:$0xff] %v5177_v53  ;;  %1489 = vst [vmem:[#allocation3 + $0x48] sm:$0xff] %v5177_v53 }
  0xa2   : > { %4081 = vmatmul.mubr.msk.bf16.vlgmr.msra.gmra.mxu1 %vm1099_vm1, %v5544_v2  ;;  %1138 = vmatprep.subr.bf16.mxu0 %v4626_v3  ;;  %1490 = vst [vmem:[#allocation3 + $0x40] sm:$0xff] %v5177_v53  ;;  %1491 = vst [vmem:[#allocation3 + $0x20] sm:$0xff] %v5177_v53 }
  0xa3   : > { %4381 = vmatpush3.bf16.msra.mxu1 %v4625_v4  ;;  %1237 = vmatprep.mubr.bf16.mxu1 %v5176_v35  ;;  %1492 = vst [vmem:[#allocation3 + $0x10] sm:$0xff] %v5177_v53  ;;  %1493 = vst [vmem:[#allocation3 + $0x38] sm:$0xff] %v5177_v53 }
  0xa4   : > { %4382 = vmatprep.subr.bf16.mxu1 %v4628_v5  ;;  %1494 = vst [vmem:[#allocation3 + $0x60] sm:$0xff] %v5177_v53  ;;  %1495 = vst [vmem:[#allocation3 + $0x70] sm:$0xff] %v5177_v53 }
  0xa5   : > { %1139 = vmatpush2.bf16.msra.mxu0 %v4629_v6  ;;  %1496 = vst [vmem:[#allocation3 + $0x78] sm:$0xff] %v5177_v53  ;;  %1497 = vst [vmem:[#allocation3 + $0x28] sm:$0xff] %v5177_v53 }
  0xa6   : > { %1140 = vmatprep.subr.bf16.mxu0 %v4631_v7  ;;  %v664_v7 = vlaneseq }
  0xa7   : > { %4383 = vmatpush3.bf16.msra.mxu1 %v4630_v8 }
  0xa8   : > { %4384 = vmatprep.subr.bf16.mxu1 %v4634_v10  ;;  %v665_v10 = vshrl.u32 %v664_v7, 7 }
  0xa9   : > { %1141 = vmatpush2.bf16.msra.mxu0 %v4635_v11 }
  0xaa   : > { %4082 = vmatmul.mubr.msk.bf16.gmra.mxu1 %vm1099_vm1, %v5552_v9  ;;  %1142 = vmatprep.subr.bf16.mxu0 %v4637_v12 }
  0xab   : > { %4385 = vmatpush3.bf16.msra.mxu1 %v4636_v13  ;;  %1247 = vmatprep.mubr.bf16.mxu1 %v5176_v35 }
  0xac   : > { %4386 = vmatprep.subr.bf16.mxu1 %v4639_v14 }
  0xad   : > { %1143 = vmatpush2.bf16.msra.mxu0 %v4640_v15  ;;  %v666_v15 = vsub.s32 0, %v665_v10 }
  0xae   : > { %1144 = vmatprep.subr.bf16.mxu0 %v4642_v16  ;;  %v670_v16 = vsub.s32 1, %v665_v10 }
  0xaf   : > { %4387 = vmatpush3.bf16.msra.mxu1 %v4641_v17 }
  0xb0   : > { %4388 = vmatprep.subr.bf16.mxu1 %v4645_v18 }
  0xb1   : > { %1145 = vmatpush2.bf16.msra.mxu0 %v4646_v20 }
  0xb2   : > { %4083 = vmatmul.mubr.msk.bf16.gmra.mxu1 %vm1099_vm1, %v5560_v19  ;;  %1146 = vmatprep.subr.bf16.mxu0 %v4648_v21 }
  0xb3   : > { %4389 = vmatpush3.bf16.msra.mxu1 %v4647_v22  ;;  %1257 = vmatprep.mubr.bf16.mxu1 %v5176_v35  ;;  %v4667_v35 = vld [vmem:[#allocation4 + $0xc4] ss:$12 sps:$4 sm:$0xff]  }
  0xb4   : > { %4390 = vmatprep.subr.bf16.mxu1 %v4650_v23 }
  0xb5   : > { %1147 = vmatpush2.bf16.msra.mxu0 %v4651_v24 }
  0xb6   : > { %1148 = vmatprep.subr.bf16.mxu0 %v4653_v25 }
  0xb7   : > { %4391 = vmatpush3.bf16.msra.mxu1 %v4652_v26 }
  0xb8   : > { %4392 = vmatprep.subr.bf16.mxu1 %v4656_v29 }
  0xb9   : > { %1149 = vmatpush2.bf16.msra.mxu0 %v4657_v30 }
  0xba   : > { %4084 = vmatmul.mubr.msk.bf16.gmra.mxu1 %vm1099_vm1, %v5571_v28  ;;  %1150 = vmatprep.subr.bf16.mxu0 %v4659_v32 }
  0xbb   : > { %4393 = vmatpush3.bf16.msra.mxu1 %v4658_v31  ;;  %1300 = vmatprep.mubr.bf16.mxu1 %v4666_v27 }
  0xbc   : > { %4394 = vmatprep.subr.bf16.mxu1 %v4661_v33 }
  0xbd   : > { %1151 = vmatpush2.bf16.msra.mxu0 %v4662_v34 }
  0xbe   : > { %1152 = vmatprep.subr.bf16.mxu0 %v4667_v35 }
  0xbf   : > { %4395 = vmatpush3.bf16.msra.mxu1 %v4663_v36 }
  0xc0   : > { %4524 = vmatprep.subr.msk.bf16.mxu1 %vm1112_vm0, %v4670_v37 }
  0xc1   : > { %1153 = vmatpush2.bf16.msra.mxu0 %v4669_v38 }
  0xc2   : > { %1301 = vmatmul.mubr.bf16.vlgmr.msra.gmra.mxu1 %v4664_v39  ;;  %4523 = vmatprep.subr.msk.bf16.mxu0 %vm1112_vm0, %v4670_v37 }
  0xc3   : > { %4516 = vmatpush3.bf16.msra.mxu1 %v1120_v41  ;;  %1308 = vmatprep.mubr.bf16.mxu1 %v4671_v40 }
  0xc4   : > { %1155 = vmatmul.mubr.bf16.vlgmr.msra.gmra.mxu0 %v4664_v39  ;;  %4510 = vmatprep.subr.bf16.mxu1 %v4674_v42 }
  0xc5   : > { %4488 = vmatpush3.bf16.msra.mxu0 %v1120_v41  ;;  %1164 = vmatprep.mubr.bf16.mxu0 %v4671_v40 }
  0xc6   : > { %4489 = vmatprep.subr.bf16.mxu0 %v4674_v42 }
  0xc7   : > { %4517 = vmatpush3.bf16.msra.mxu1 %v4674_v42 }
  0xc8   : > { %4511 = vmatprep.subr.bf16.mxu1 %v4675_v43 }
  0xc9   : > { %4490 = vmatpush3.bf16.msra.mxu0 %v4674_v42 }
  0xca   : > { %1309 = vmatmul.mubr.bf16.gmra.mxu1 %v4673_v44  ;;  %4491 = vmatprep.subr.bf16.mxu0 %v4675_v43 }
  0xcb   : > { %4518 = vmatpush3.bf16.msra.mxu1 %v4675_v43  ;;  %1316 = vmatprep.mubr.bf16.mxu1 %v4676_v45 }
  0xcc   : > { %1165 = vmatmul.mubr.bf16.gmra.mxu0 %v4673_v44  ;;  %4512 = vmatprep.subr.bf16.mxu1 %v4679_v46 }
  0xcd   : > { %4492 = vmatpush3.bf16.msra.mxu0 %v4675_v43  ;;  %1174 = vmatprep.mubr.bf16.mxu0 %v4676_v45 }
  0xce   : > { %4493 = vmatprep.subr.bf16.mxu0 %v4679_v46 }
  0xcf   : > { %4519 = vmatpush3.bf16.msra.mxu1 %v4679_v46 }
  0xd0   : > { %4513 = vmatprep.subr.bf16.mxu1 %v4680_v47 }
  0xd1   : > { %4494 = vmatpush3.bf16.msra.mxu0 %v4679_v46 }
  0xd2   : > { %1317 = vmatmul.mubr.bf16.gmra.mxu1 %v4678_v48  ;;  %4495 = vmatprep.subr.bf16.mxu0 %v4680_v47 }
  0xd3   : > { %4520 = vmatpush3.bf16.msra.mxu1 %v4680_v47  ;;  %1324 = vmatprep.mubr.bf16.mxu1 %v4681_v49 }
  0xd4   : > { %1175 = vmatmul.mubr.bf16.gmra.mxu0 %v4678_v48  ;;  %4514 = vmatprep.subr.bf16.mxu1 %v4684_v50 }
  0xd5   : > { %4496 = vmatpush3.bf16.msra.mxu0 %v4680_v47  ;;  %1184 = vmatprep.mubr.bf16.mxu0 %v4681_v49 }
  0xd6   : > { %4497 = vmatprep.subr.bf16.mxu0 %v4684_v50 }
  0xd7   : > { %4521 = vmatpush3.bf16.msra.mxu1 %v4684_v50 }
  0xd8   : > { %4515 = vmatprep.subr.bf16.mxu1 %v4685_v51 }
  0xd9   : > { %4498 = vmatpush3.bf16.msra.mxu0 %v4684_v50 }
  0xda   : > { %1325 = vmatmul.mubr.bf16.gmra.mxu1 %v4683_v52  ;;  %4499 = vmatprep.subr.bf16.mxu0 %v4685_v51 }
  0xdb   : > { %4522 = vmatpush3.bf16.msra.mxu1 %v4685_v51  ;;  %4505 = vmatprep.mubr.msk.bf16.mxu1 %vm1099_vm1, %v5560_v19  ;;  %v662_v19 = vld [vmem:[%s6117_s2] sm:$0x7] }
  0xdc   : > { %1185 = vmatmul.mubr.bf16.gmra.mxu0 %v4683_v52  ;;  %v5628_v22 = vrot.slane %v662_v19, %v666_v15  ;;  %v5630_v23 = vrot.slane %v662_v19, %v670_v16 }
  0xdd   : > { %4500 = vmatpush3.bf16.msra.mxu0 %v4685_v51  ;;  %4501 = vmatprep.mubr.msk.bf16.mxu0 %vm1099_vm1, %v5544_v2 }
  0xe2   : > { %4506 = vmatmul.mubr.msk.bf16.vlgmr.msra.gmra.mxu1 %vm1099_vm1, %v5571_v28  ;;  %v674_v28 = vsub.s32 2, %v665_v10 }
  0xe4   : > { %4502 = vmatmul.mubr.msk.bf16.vlgmr.msra.gmra.mxu0 %vm1099_vm1, %v5552_v9  ;;  %v5638_v40 = vrot.slane %v662_v19, %v674_v28 }
 0x162   : > { %v1229_v54 = vpop.f32.mrf.mxu1 }
 0x164   : > { %v1231_v55 = vpop.f32.mrf.mxu1 }
 0x166   : > { %v1233_v56 = vpop.f32.mrf.mxu1 }
 0x168   : > { %v1235_v57 = vpop.f32.mrf.mxu1 }
 0x16a   : > { %v1239_v58 = vpop.f32.mrf.mxu1 }
 0x16c   : > { %v5607_v59 = vpop.f32.mrf.mxu1 }
 0x16e   : > { %v5609_v60 = vpop.f32.mrf.mxu1 }
 0x170   : > { %v5611_v61 = vpop.f32.mrf.mxu1 }
 0x172   : > { %v1249_v62 = vpop.f32.mrf.mxu1 }
 0x174   : > { %v1251_v63 = vpop.f32.mrf.mxu1 }
 0x176   : > { %v5613_v0 = vpop.f32.mrf.mxu1 }
 0x178   : > { %v5615_v1 = vpop.f32.mrf.mxu1 }
 0x17a   : > { %v5617_v2 = vpop.f32.mrf.mxu1 }
 0x17c   : > { %v5619_v3 = vpop.f32.mrf.mxu1 }
 0x17e   : > { %v5621_v4 = vpop.f32.mrf.mxu1 }
 0x180   : > { %v5623_v5 = vpop.f32.mrf.mxu1 }
 0x182   : > { %v4396_v6 = vpop.f32.mrf.mxu1 }
 0x184   : > { %v4397_v8 = vpop.f32.mrf.mxu1  ;;  %v1156_v9 = vpop.f32.mrf.mxu0 }
 0x185   : > { %v1157_v29 = vadd.f32 %v1156_v9, %v5628_v22  ;;  %v4398_v38 = vadd.f32 %v4397_v8, %v4396_v6 }
 0x186   : > { %v4399_v11 = vpop.f32.mrf.mxu1  ;;  %v1158_v12 = vpop.f32.mrf.mxu0 }
 0x187   : > { %v1159_v30 = vadd.f32 %v1158_v12, %v5630_v23  ;;  %v1230_v41 = vadd.f32 %v1229_v54, %v1157_v29  ;;  %v5645_v8 = vadd.f32 %v4398_v38, %v5638_v40 }
 0x188   : > { %v4400_v13 = vpop.f32.mrf.mxu1  ;;  %v1160_v14 = vpop.f32.mrf.mxu0 }
 0x189   : > { %v1161_v33 = vadd.f32 %v1160_v14, %v5628_v22  ;;  %v1232_v42 = vadd.f32 %v1231_v55, %v1159_v30  ;;  %v1398_v54 = vmax.f32 %v1230_v41, 0.0  ;;  %v5647_v9 = vadd.f32 %v4400_v13, %v4399_v11 }
 0x18a   : > { %v4402_v17 = vpop.f32.mrf.mxu1  ;;  %v1162_v18 = vpop.f32.mrf.mxu0 }
 0x18b   : > { %v1163_v34 = vadd.f32 %v1162_v18, %v5630_v23  ;;  %v1234_v45 = vadd.f32 %v1233_v56, %v1161_v33  ;;  %v1399_v55 = vmax.f32 %v1232_v42, 0.0 }
 0x18c   : > { %v4403_v20 = vpop.f32.mrf.mxu1  ;;  %v1166_v21 = vpop.f32.mrf.mxu0 }
 0x18d   : > { %v1167_v35 = vadd.f32 %v1166_v21, %v5628_v22  ;;  %v1236_v48 = vadd.f32 %v1235_v57, %v1163_v34  ;;  %v4404_v49 = vadd.f32 %v4403_v20, %v4402_v17  ;;  %v1401_v10 = vmax.f32 %v1234_v45, 0.0 }
 0x18e   : > { %v4405_v24 = vpop.f32.mrf.mxu1  ;;  %v1168_v25 = vpop.f32.mrf.mxu0 }
 0x18f   : > { %v5641_v50 = vadd.f32 %v1239_v58, %v1167_v35  ;;  %v1169_v56 = vadd.f32 %v1168_v25, %v5630_v23  ;;  %v1311_v19 = vadd.f32 %v4404_v49, %v5638_v40 }
 0x190   : > { %v4406_v26 = vpop.f32.mrf.mxu1  ;;  %v1170_v27 = vpop.f32.mrf.mxu0 }
 0x191   : > { %v1404_v15 = vmax.f32 %v5641_v50, 0.0  ;;  %v1242_v25 = vadd.f32 %v5607_v59, %v1169_v56  ;;  %v1171_v28 = vadd.f32 %v1170_v27, %v5628_v22  ;;  %v4407_v34 = vadd.f32 %v4406_v26, %v4405_v24 }
 0x192   : > { %v4408_v31 = vpop.f32.mrf.mxu1  ;;  %v1172_v32 = vpop.f32.mrf.mxu0 }
 0x193   : > { %v1405_v24 = vmax.f32 %v1242_v25, 0.0  ;;  %v1244_v26 = vadd.f32 %v5609_v60, %v1171_v28 }
 0x194   : > { %v4409_v36 = vpop.f32.mrf.mxu1  ;;  %v1176_v37 = vpop.f32.mrf.mxu0 }
 0x195   : > { %v1177_v39 = vadd.f32 %v1176_v37, %v5628_v22 }
 0x196   : > { %v4411_v43 = vpop.f32.mrf.mxu1  ;;  %v1178_v44 = vpop.f32.mrf.mxu0 }
 0x197   : > { %v1250_v46 = vadd.f32 %v1249_v62, %v1177_v39  ;;  %v1179_v47 = vadd.f32 %v1178_v44, %v5630_v23  ;;  %v4410_v39 = vadd.f32 %v4409_v36, %v4408_v31 }
 0x198   : > { %v4412_v51 = vpop.f32.mrf.mxu1  ;;  %v1180_v52 = vpop.f32.mrf.mxu0 }
 0x199   : > { %v1410_v53 = vmax.f32 %v1250_v46, 0.0  ;;  %v1252_v6 = vadd.f32 %v1251_v63, %v1179_v47  ;;  %v1181_v7 = vadd.f32 %v1180_v52, %v5628_v22  ;;  %v1402_v63 = vmax.f32 %v1236_v48, 0.0 }
 0x19a   : > { %v4414_v62 = vpop.f32.mrf.mxu1  ;;  %v1182_v57 = vpop.f32.mrf.mxu0 }
 0x19b   : > { %v1411_v58 = vmax.f32 %v1252_v6, 0.0  ;;  %v1254_v12 = vadd.f32 %v5613_v0, %v1181_v7  ;;  %v1183_v14 = vadd.f32 %v1182_v57, %v5630_v23  ;;  %v1422_v16 = vmax.f32 %v1398_v54, %v1410_v53 }
 0x19c   : > { %v4415_v17 = vpop.f32.mrf.mxu1  ;;  %v1186_v18 = vpop.f32.mrf.mxu0  ;;  %v1173_v0 = vadd.f32 %v1172_v32, %v5630_v23  ;;  %v1314_v54 = vadd.f32 %v4407_v34, %v5638_v40 }
 0x19d   : > { %v1423_v11 = vmax.f32 %v1399_v55, %v1411_v58  ;;  %v1413_v13 = vmax.f32 %v1254_v12, 0.0  ;;  %v1256_v20 = vadd.f32 %v5615_v1, %v1183_v14  ;;  %v4416_v21 = vadd.f32 %v4415_v17, %v4414_v62 }
 0x19e   : > { %v1187_v29 = vadd.f32 %v1186_v18, %v5628_v22  ;;  %v4417_v30 = vpop.f32.mrf.mxu1  ;;  %v1188_v33 = vpop.f32.mrf.mxu0  ;;  %v1246_v47 = vadd.f32 %v5611_v61, %v1173_v0 }
 0x19f   : > { %v4372_v35 = vpack.c.bf16 %v1423_v11, %v1422_v16  ;;  %v1414_v37 = vmax.f32 %v1256_v20, 0.0  ;;  %v1189_v38 = vadd.f32 %v1188_v33, %v5630_v23  ;;  %v1425_v41 = vmax.f32 %v1401_v10, %v1413_v13 }
 0x1a0   : > { %v1260_v1 = vadd.f32 %v5617_v2, %v1187_v29  ;;  %v4418_v42 = vpop.f32.mrf.mxu1  ;;  %v1190_v44 = vpop.f32.mrf.mxu0  ;;  %v1327_v59 = vadd.f32 %v4416_v21, %v5638_v40  ;;  %v4413_v2 = vadd.f32 %v4412_v51, %v4411_v43  ;;  %v1407_v43 = vmax.f32 %v1244_v26, 0.0 }
 0x1a1   : > { %1474 = vst [vmem:[#allocation2] sm:$0xff] %v4372_v35  ;;  %v1426_v27 = vmax.f32 %v1402_v63, %v1414_v37  ;;  %v1262_v32 = vadd.f32 %v5619_v3, %v1189_v38  ;;  %v4419_v45 = vadd.f32 %v4418_v42, %v4417_v30  ;;  %v1191_v46 = vadd.f32 %v1190_v44, %v5628_v22 }
 0x1a2   : > { %v1416_v31 = vmax.f32 %v1260_v1, 0.0  ;;  %v4507_v36 = vpop.f32.mrf.mxu1  ;;  %v1192_v48 = vpop.f32.mrf.mxu0  ;;  %v1319_v3 = vadd.f32 %v4410_v39, %v5638_v40  ;;  %v1322_v14 = vadd.f32 %v4413_v2, %v5638_v40 }
 0x1a3   : > { %v4374_v49 = vpack.c.bf16 %v1426_v27, %v1425_v41  ;;  %v1417_v50 = vmax.f32 %v1262_v32, 0.0  ;;  %v1264_v52 = vadd.f32 %v5621_v4, %v1191_v46  ;;  %v1392_v53 = vadd.f32 %v4507_v36, %v1327_v59 }
 0x1a4   : > { %v1193_v6 = vadd.f32 %v1192_v48, %v5630_v23  ;;  %v1383_v7 = vpop.f32.mrf.mxu1  ;;  %v4503_v22 = vpop.f32.mrf.mxu0  ;;  %v1428_v60 = vmax.f32 %v1404_v15, %v1416_v31  ;;  %v1330_v56 = vadd.f32 %v4419_v45, %v5638_v40  ;;  %v1408_v23 = vmax.f32 %v1246_v47, 0.0 }
 0x1a5   : > { %1476 = vst [vmem:[#allocation2 + $0xc] sm:$0xff] %v4374_v49  ;;  %v1429_v61 = vmax.f32 %v1405_v24, %v1417_v50  ;;  %v1419_v55 = vmax.f32 %v1264_v52, 0.0  ;;  %v1384_v62 = vadd.f32 %v1383_v7, %v1319_v3  ;;  %v1376_v4 = vadd.f32 %v4503_v22, %v1311_v19 }
 0x1a6   : > { %v1266_v51 = vadd.f32 %v5623_v5, %v1193_v6  ;;  %v4508_v57 = vpop.f32.mrf.mxu1  ;;  %v1367_v10 = vpop.f32.mrf.mxu0  ;;  %v1418_v63 = vmax.f32 %v1392_v53, 0.0  ;;  %v1306_v19 = vadd.f32 %v5647_v9, %v5638_v40 }
 0x1a7   : > { %v4376_v58 = vpack.c.bf16 %v1429_v61, %v1428_v60  ;;  %v1395_v12 = vadd.f32 %v4508_v57, %v1330_v56  ;;  %v1406_v17 = vmax.f32 %v1376_v4, 0.0  ;;  %v1368_v15 = vadd.f32 %v1367_v10, %v5645_v8 }
 0x1a8   : > { %v1420_v16 = vmax.f32 %v1266_v51, 0.0  ;;  %v1386_v18 = vpop.f32.mrf.mxu1  ;;  %v4504_v11 = vpop.f32.mrf.mxu0  ;;  %v1431_v13 = vmax.f32 %v1407_v43, %v1419_v55  ;;  %v1412_v25 = vmax.f32 %v1384_v62, 0.0 }
 0x1a9   : > { %1478 = vst [vmem:[#allocation2 + $0x18] sm:$0xff] %v4376_v58  ;;  %v1387_v20 = vadd.f32 %v1386_v18, %v1322_v14  ;;  %v1379_v5 = vadd.f32 %v4504_v11, %v1314_v54  ;;  %v1430_v28 = vmax.f32 %v1406_v17, %v1418_v63  ;;  %v1400_v0 = vmax.f32 %v1368_v15, 0.0 }
 0x1aa   : > { %v1432_v21 = vmax.f32 %v1408_v23, %v1420_v16  ;;  %v1370_v29 = vpop.f32.mrf.mxu0  ;;  %v1421_v30 = vmax.f32 %v1395_v12, 0.0 }
 0x1ab   : > { %v1409_v33 = vmax.f32 %v1379_v5, 0.0  ;;  %v1371_v34 = vadd.f32 %v1370_v29, %v1306_v19  ;;  %v4377_v37 = vpack.c.bf16 %v1430_v28, %v1430_v28  ;;  %v1424_v8 = vmax.f32 %v1400_v0, %v1412_v25 }
 0x1ac   : > { %v4378_v35 = vpack.c.bf16 %v1432_v21, %v1431_v13  ;;  %v1415_v38 = vmax.f32 %v1387_v20, 0.0 }
 0x1ad   : > { %v1433_v39 = vmax.f32 %v1409_v33, %v1421_v30  ;;  %v1403_v41 = vmax.f32 %v1371_v34, 0.0  ;;  %1479 = vst [vmem:[#allocation2 + $0x20] sm:$0xf] %v4377_v37  ;;  %v4373_v1 = vpack.c.bf16 %v1424_v8, %v1424_v8 }
 0x1ae   : > { %1480 = vst [vmem:[#allocation2 + $0x24] sm:$0xff] %v4378_v35 }
 0x1af   : > { %v4379_v42 = vpack.c.bf16 %v1433_v39, %v1433_v39  ;;  %v1427_v44 = vmax.f32 %v1403_v41, %v1415_v38  ;;  %1475 = vst [vmem:[#allocation2 + $0x8] sm:$0xf] %v4373_v1 }
 0x1b1   : > { %1481 = vst [vmem:[#allocation2 + $0x2c] sm:$0xf] %v4379_v42  ;;  %v4375_v40 = vpack.c.bf16 %v1427_v44, %v1427_v44 }
 0x1b3   : > { %1477 = vst [vmem:[#allocation2 + $0x14] sm:$0xf] %v4375_v40 }
 0x1b4 PF: > { %v4686_v9 = vld [vmem:[%s5521_s24 + $0xe4] ss:$16 sps:$4 sm:$0xff]   ;;  %v5178_v27 = vmov 0   ;;  %v4690_v32 = vld [vmem:[%s5521_s24 + $0xe0] ss:$16 sps:$4 sm:$0xff]   ;;  %p4327_p13 = scmp.ne.s32.totalorder %s5238_s28, 1 }
 0x1b5   : > { %v4688_v59 = vld [vmem:[%s5521_s24 + $0x2e4] ss:$16 sps:$4 sm:$0xff]   ;;  %2221 = vmatprep.mubr.bf16.mxu1 %v5178_v27  ;;  %2136 = vmatprep.subr.bf16.mxu0 %v4686_v9  ;;  %v4691_v45 = vld [vmem:[%s5521_s24 + $0x2e0] ss:$16 sps:$4 sm:$0xff]   ;;  %v4739_v12 = vld [vmem:[%s5521_s24 + $0xec] ss:$16 sps:$4 sm:$0xff]  }
 0x1b6   : > { %2189 = vmatprep.subr.bf16.mxu1 %v4688_v59  ;;  %v4692_v46 = vld [vmem:[%s5521_s24 + $0xc4] ss:$16 sps:$4 sm:$0xff]   ;;  %2137 = vmatpush1.bf16.msra.mxu0 %v4690_v32  ;;  %v4696_v26 = vld [vmem:[%s5521_s24 + $0xc0] ss:$16 sps:$4 sm:$0xff]   ;;  %v4737_v63 = vld [vmem:[%s5521_s24 + $0xe8] ss:$16 sps:$4 sm:$0xff]  }
 0x1b7   : > { %2190 = vmatpush1.bf16.msra.mxu1 %v4691_v45  ;;  %v4694_v24 = vld [vmem:[%s5521_s24 + $0x2c4] ss:$16 sps:$4 sm:$0xff]   ;;  %2138 = vmatprep.subr.bf16.mxu0 %v4692_v46  ;;  %v4697_v47 = vld [vmem:[%s5521_s24 + $0x2c0] ss:$16 sps:$4 sm:$0xff]   ;;  %v4745_v15 = vld [vmem:[%s5521_s24 + $0xcc] ss:$16 sps:$4 sm:$0xff]  }
 0x1b8   : > { %2191 = vmatprep.subr.bf16.mxu1 %v4694_v24  ;;  %v4698_v31 = vld [vmem:[%s5521_s24 + $0xa4] ss:$16 sps:$4 sm:$0xff]   ;;  %v4702_v48 = vld [vmem:[%s5521_s24 + $0xa0] ss:$16 sps:$4 sm:$0xff]   ;;  %v4743_v18 = vld [vmem:[%s5521_s24 + $0xc8] ss:$16 sps:$4 sm:$0xff]  }
 0x1b9   : > { %v4700_v36 = vld [vmem:[%s5521_s24 + $0x2a4] ss:$16 sps:$4 sm:$0xff]   ;;  %v4703_v2 = vld [vmem:[%s5521_s24 + $0x2a0] ss:$16 sps:$4 sm:$0xff]   ;;  %v4751_v20 = vld [vmem:[%s5521_s24 + $0xac] ss:$16 sps:$4 sm:$0xff]  }
 0x1ba   : > { %2139 = vmatpush1.bf16.msra.mxu0 %v4696_v26  ;;  %v4704_v49 = vld [vmem:[%s5521_s24 + $0x84] ss:$16 sps:$4 sm:$0xff]   ;;  %v4708_v52 = vld [vmem:[%s5521_s24 + $0x80] ss:$16 sps:$4 sm:$0xff]   ;;  %v5711_v14 = vld [vmem:[#allocation2 + $0x8] ss:$12 sps:$4 sm:$0xff]  }
 0x1bb   : > { %2192 = vmatpush1.bf16.msra.mxu1 %v4697_v47  ;;  %2140 = vmatprep.subr.bf16.mxu0 %v4698_v31  ;;  %v4706_v50 = vld [vmem:[%s5521_s24 + $0x284] ss:$16 sps:$4 sm:$0xff]   ;;  %v4709_v53 = vld [vmem:[%s5521_s24 + $0x280] ss:$16 sps:$4 sm:$0xff]   ;;  %v4749_v5 = vld [vmem:[%s5521_s24 + $0xa8] ss:$16 sps:$4 sm:$0xff]  }
 0x1bc   : > { %2193 = vmatprep.subr.bf16.mxu1 %v4700_v36  ;;  %v4710_v6 = vld [vmem:[%s5521_s24 + $0x64] ss:$16 sps:$4 sm:$0xff]   ;;  %v4714_v7 = vld [vmem:[%s5521_s24 + $0x60] ss:$16 sps:$4 sm:$0xff]   ;;  %v4757_v25 = vld [vmem:[%s5521_s24 + $0x8c] ss:$16 sps:$4 sm:$0xff]  }
 0x1bd   : > { %v4712_v3 = vld [vmem:[%s5521_s24 + $0x264] ss:$16 sps:$4 sm:$0xff]   ;;  %v4715_v22 = vld [vmem:[%s5521_s24 + $0x260] ss:$16 sps:$4 sm:$0xff]   ;;  %v4755_v28 = vld [vmem:[%s5521_s24 + $0x88] ss:$16 sps:$4 sm:$0xff]  }
 0x1be   : > { %2141 = vmatpush1.bf16.msra.mxu0 %v4702_v48  ;;  %v4716_v54 = vld [vmem:[%s5521_s24 + $0x44] ss:$16 sps:$4 sm:$0xff]   ;;  %v4720_v61 = vld [vmem:[%s5521_s24 + $0x40] ss:$16 sps:$4 sm:$0xff]   ;;  %v4763_v33 = vld [vmem:[%s5521_s24 + $0x6c] ss:$16 sps:$4 sm:$0xff]  }
 0x1bf   : > { %2194 = vmatpush1.bf16.msra.mxu1 %v4703_v2  ;;  %2142 = vmatprep.subr.bf16.mxu0 %v4704_v49  ;;  %v4718_v60 = vld [vmem:[%s5521_s24 + $0x244] ss:$16 sps:$4 sm:$0xff]   ;;  %v4721_v55 = vld [vmem:[%s5521_s24 + $0x240] ss:$16 sps:$4 sm:$0xff]   ;;  %v4761_v34 = vld [vmem:[%s5521_s24 + $0x68] ss:$16 sps:$4 sm:$0xff]  }
 0x1c0   : > { %2195 = vmatprep.subr.bf16.mxu1 %v4706_v50  ;;  %v4722_v56 = vld [vmem:[%s5521_s24 + $0x24] ss:$16 sps:$4 sm:$0xff]   ;;  %v4726_v51 = vld [vmem:[%s5521_s24 + $0x20] ss:$16 sps:$4 sm:$0xff]   ;;  %v4769_v8 = vld [vmem:[%s5521_s24 + $0x4c] ss:$16 sps:$4 sm:$0xff]  }
 0x1c1   : > { %v4724_v43 = vld [vmem:[%s5521_s24 + $0x224] ss:$16 sps:$4 sm:$0xff]   ;;  %v4727_v62 = vld [vmem:[%s5521_s24 + $0x220] ss:$16 sps:$4 sm:$0xff]   ;;  %v4767_v38 = vld [vmem:[%s5521_s24 + $0x48] ss:$16 sps:$4 sm:$0xff]  }
 0x1c2   : > { %2143 = vmatpush1.bf16.msra.mxu0 %v4708_v52  ;;  %v4728_v4 = vld [vmem:[%s5521_s24 + $0x4] ss:$16 sps:$4 sm:$0xff]   ;;  %v4732_v10 = vld [vmem:[%s5521_s24] ss:$16 sps:$4 sm:$0xff]   ;;  %v4775_v1 = vld [vmem:[%s5521_s24 + $0x2c] ss:$16 sps:$4 sm:$0xff]  }
 0x1c3   : > { %2196 = vmatpush1.bf16.msra.mxu1 %v4709_v53  ;;  %2144 = vmatprep.subr.bf16.mxu0 %v4710_v6  ;;  %v4730_v57 = vld [vmem:[%s5521_s24 + $0x204] ss:$16 sps:$4 sm:$0xff]   ;;  %v4733_v23 = vld [vmem:[%s5521_s24 + $0x200] ss:$16 sps:$4 sm:$0xff]   ;;  %v4773_v44 = vld [vmem:[%s5521_s24 + $0x28] ss:$16 sps:$4 sm:$0xff]  }
 0x1c4   : > { %2197 = vmatprep.subr.bf16.mxu1 %v4712_v3  ;;  %v4734_v58 = vld [vmem:[%s5521_s24 + $0x1e4] ss:$16 sps:$4 sm:$0xff]   ;;  %v4740_v16 = vld [vmem:[%s5521_s24 + $0x1e0] ss:$16 sps:$4 sm:$0xff]   ;;  %v4781_v59 = vld [vmem:[%s5521_s24 + $0xc] ss:$16 sps:$4 sm:$0xff]  }
 0x1c5   : > { %v4741_v17 = vld [vmem:[%s5521_s24 + $0x1c4] ss:$16 sps:$4 sm:$0xff]   ;;  %v4746_v11 = vld [vmem:[%s5521_s24 + $0x1c0] ss:$16 sps:$4 sm:$0xff]   ;;  %v4779_v32 = vld [vmem:[%s5521_s24 + $0x8] ss:$16 sps:$4 sm:$0xff]  }
 0x1c6   : > { %2145 = vmatpush1.bf16.msra.mxu0 %v4714_v7  ;;  %v4747_v13 = vld [vmem:[%s5521_s24 + $0x1a4] ss:$16 sps:$4 sm:$0xff]   ;;  %v4752_v19 = vld [vmem:[%s5521_s24 + $0x1a0] ss:$16 sps:$4 sm:$0xff]   ;;  %v4788_v46 = vld [vmem:[%s5521_s24 + $0x1ec] ss:$16 sps:$4 sm:$0xff]  }
 0x1c7   : > { %2198 = vmatpush1.bf16.msra.mxu1 %v4715_v22  ;;  %2146 = vmatprep.subr.bf16.mxu0 %v4716_v54  ;;  %v4753_v21 = vld [vmem:[%s5521_s24 + $0x184] ss:$16 sps:$4 sm:$0xff]   ;;  %v4758_v0 = vld [vmem:[%s5521_s24 + $0x180] ss:$16 sps:$4 sm:$0xff]   ;;  %v4791_v24 = vld [vmem:[%s5521_s24 + $0x2ec] ss:$16 sps:$4 sm:$0xff]  }
 0x1c8   : > { %2199 = vmatprep.subr.bf16.mxu1 %v4718_v60  ;;  %v4759_v29 = vld [vmem:[%s5521_s24 + $0x164] ss:$16 sps:$4 sm:$0xff]   ;;  %v4764_v35 = vld [vmem:[%s5521_s24 + $0x160] ss:$16 sps:$4 sm:$0xff]   ;;  %v4786_v47 = vld [vmem:[%s5521_s24 + $0x1e8] ss:$16 sps:$4 sm:$0xff]  }
 0x1c9   : > { %v4785_v30 = vld [vmem:[#allocation2 + $0x4] ss:$12 sps:$4 sm:$0xff]   ;;  %v4770_v39 = vld [vmem:[%s5521_s24 + $0x140] ss:$16 sps:$4 sm:$0xff]   ;;  %v4794_v36 = vld [vmem:[%s5521_s24 + $0x1cc] ss:$16 sps:$4 sm:$0xff]  }
 0x1ca   : > { %2147 = vmatpush1.bf16.msra.mxu0 %v4720_v61  ;;  %2168 = vmatprep.mubr.bf16.mxu0 %v4785_v30  ;;  %v4765_v37 = vld [vmem:[%s5521_s24 + $0x144] ss:$16 sps:$4 sm:$0xff]   ;;  %v4776_v40 = vld [vmem:[%s5521_s24 + $0x120] ss:$16 sps:$4 sm:$0xff]   ;;  %v4789_v31 = vld [vmem:[%s5521_s24 + $0x2e8] ss:$16 sps:$4 sm:$0xff]  }
 0x1cb   : > { %2200 = vmatpush1.bf16.msra.mxu1 %v4721_v55  ;;  %2148 = vmatprep.subr.bf16.mxu0 %v4722_v56  ;;  %v4771_v41 = vld [vmem:[%s5521_s24 + $0x124] ss:$16 sps:$4 sm:$0xff]   ;;  %v4782_v45 = vld [vmem:[%s5521_s24 + $0x100] ss:$16 sps:$4 sm:$0xff]   ;;  %v4797_v48 = vld [vmem:[%s5521_s24 + $0x2cc] ss:$16 sps:$4 sm:$0xff]  }
 0x1cc   : > { %2201 = vmatprep.subr.bf16.mxu1 %v4724_v43  ;;  %v5739_v42 = vld [vmem:[#allocation2 + $0x20] ss:$12 sps:$4 sm:$0xff]   ;;  %v5756_v2 = vld [vmem:[#allocation2 + $0x1c] ss:$12 sps:$4 sm:$0xff]   ;;  %v4792_v49 = vld [vmem:[%s5521_s24 + $0x1c8] ss:$16 sps:$4 sm:$0xff]  }
 0x1cd   : > { %v4777_v9 = vld [vmem:[%s5521_s24 + $0x104] ss:$16 sps:$4 sm:$0xff]   ;;  %v4795_v50 = vld [vmem:[%s5521_s24 + $0x2c8] ss:$16 sps:$4 sm:$0xff]   ;;  %v4803_v52 = vld [vmem:[%s5521_s24 + $0x1ac] ss:$16 sps:$4 sm:$0xff]  }
 0x1ce   : > { %2149 = vmatpush1.bf16.msra.mxu0 %v4726_v51  ;;  %v5750_v26 = vld [vmem:[#allocation2] ss:$12 sps:$4 sm:$0xff]   ;;  %v4806_v53 = vld [vmem:[%s5521_s24 + $0x2ac] ss:$16 sps:$4 sm:$0xff]   ;;  %v4801_v3 = vld [vmem:[%s5521_s24 + $0x1a8] ss:$16 sps:$4 sm:$0xff]  }
 0x1cf   : > { %2202 = vmatpush1.bf16.msra.mxu1 %v4727_v62  ;;  %2150 = vmatprep.subr.bf16.mxu0 %v4728_v4  ;;  %v5764_v6 = vld [vmem:[#allocation2 + $0x18] ss:$12 sps:$4 sm:$0xff]  }
 0x1d0   : > { %2203 = vmatprep.subr.bf16.mxu1 %v4730_v57  ;;  %v4804_v7 = vld [vmem:[%s5521_s24 + $0x2a8] ss:$16 sps:$4 sm:$0xff]   ;;  %v4810_v22 = vld [vmem:[%s5521_s24 + $0x18c] ss:$16 sps:$4 sm:$0xff]  }
 0x1d1   : > { %v4813_v54 = vld [vmem:[%s5521_s24 + $0x28c] ss:$16 sps:$4 sm:$0xff]   ;;  %v4808_v60 = vld [vmem:[%s5521_s24 + $0x188] ss:$16 sps:$4 sm:$0xff]  }
 0x1d2   : > { %2151 = vmatpush1.bf16.msra.mxu0 %v4732_v10  ;;  %v4811_v61 = vld [vmem:[%s5521_s24 + $0x288] ss:$16 sps:$4 sm:$0xff]   ;;  %v4816_v55 = vld [vmem:[%s5521_s24 + $0x16c] ss:$16 sps:$4 sm:$0xff]  }
 0x1d3   : > { %2204 = vmatpush1.bf16.msra.mxu1 %v4733_v23  ;;  %2152 = vmatprep.subr.bf16.mxu0 %v4734_v58  ;;  %v4819_v56 = vld [vmem:[%s5521_s24 + $0x26c] ss:$16 sps:$4 sm:$0xff]   ;;  %v4814_v43 = vld [vmem:[%s5521_s24 + $0x168] ss:$16 sps:$4 sm:$0xff]  }
 0x1d4   : > { %2242 = vmatprep.subr.bf16.mxu1 %v4739_v12  ;;  %v4817_v51 = vld [vmem:[%s5521_s24 + $0x268] ss:$16 sps:$4 sm:$0xff]   ;;  %v4822_v62 = vld [vmem:[%s5521_s24 + $0x14c] ss:$16 sps:$4 sm:$0xff]  }
 0x1d5   : > { %v4825_v4 = vld [vmem:[%s5521_s24 + $0x24c] ss:$16 sps:$4 sm:$0xff]   ;;  %v4820_v57 = vld [vmem:[%s5521_s24 + $0x148] ss:$16 sps:$4 sm:$0xff]  }
 0x1d6   : > { %2222 = vmatmul.mubr.bf16.vlgmr.msra.gmra.mxu1 %v5711_v14  ;;  %2153 = vmatpush2.bf16.msra.mxu0 %v4740_v16  ;;  %v4823_v10 = vld [vmem:[%s5521_s24 + $0x248] ss:$16 sps:$4 sm:$0xff]   ;;  %v4828_v23 = vld [vmem:[%s5521_s24 + $0x12c] ss:$16 sps:$4 sm:$0xff]  }
 0x1d7   : > { %2243 = vmatpush1.bf16.msra.mxu1 %v4737_v63  ;;  %2154 = vmatprep.subr.bf16.mxu0 %v4741_v17  ;;  %v4831_v58 = vld [vmem:[%s5521_s24 + $0x22c] ss:$16 sps:$4 sm:$0xff]   ;;  %v4826_v12 = vld [vmem:[%s5521_s24 + $0x128] ss:$16 sps:$4 sm:$0xff]  }
 0x1d8   : > { %2244 = vmatprep.subr.bf16.mxu1 %v4745_v15  ;;  %2231 = vmatprep.mubr.bf16.mxu1 %v5178_v27  ;;  %v4829_v63 = vld [vmem:[%s5521_s24 + $0x228] ss:$16 sps:$4 sm:$0xff]   ;;  %v4834_v16 = vld [vmem:[%s5521_s24 + $0x10c] ss:$16 sps:$4 sm:$0xff]  }
 0x1d9   : > { %v4837_v17 = vld [vmem:[%s5521_s24 + $0x20c] ss:$16 sps:$4 sm:$0xff]   ;;  %v4832_v15 = vld [vmem:[%s5521_s24 + $0x108] ss:$16 sps:$4 sm:$0xff]  }
 0x1da   : > { %2155 = vmatpush2.bf16.msra.mxu0 %v4746_v11  ;;  %v4840_v11 = vld [vmem:[%s5523_s10 + $0xe4] ss:$16 sps:$4 sm:$0xff]  }
 0x1db   : > { %2245 = vmatpush1.bf16.msra.mxu1 %v4743_v18  ;;  %2156 = vmatprep.subr.bf16.mxu0 %v4747_v13  ;;  %v4835_v18 = vld [vmem:[%s5521_s24 + $0x208] ss:$16 sps:$4 sm:$0xff]   ;;  %v4838_v13 = vld [vmem:[%s5523_s10 + $0xe0] ss:$16 sps:$4 sm:$0xff]  }
 0x1dc   : > { %2246 = vmatprep.subr.bf16.mxu1 %v4751_v20  ;;  %v4843_v20 = vld [vmem:[%s5523_s10 + $0xc4] ss:$16 sps:$4 sm:$0xff]  }
 0x1de   : > { %2157 = vmatpush2.bf16.msra.mxu0 %v4752_v19  ;;  %2232 = vmatmul.mubr.bf16.gmra.mxu1 %v5739_v42  ;;  %v4846_v19 = vld [vmem:[%s5523_s10 + $0xa4] ss:$16 sps:$4 sm:$0xff]  }
 0x1df   : > { %2247 = vmatpush1.bf16.msra.mxu1 %v4749_v5  ;;  %2158 = vmatprep.subr.bf16.mxu0 %v4753_v21  ;;  %v4841_v5 = vld [vmem:[%s5523_s10 + $0xc0] ss:$16 sps:$4 sm:$0xff]  }
 0x1e0   : > { %2248 = vmatprep.subr.bf16.mxu1 %v4757_v25  ;;  %2274 = vmatprep.mubr.bf16.mxu1 %v4785_v30  ;;  %v4844_v21 = vld [vmem:[%s5523_s10 + $0xa0] ss:$16 sps:$4 sm:$0xff]   ;;  %v4849_v25 = vld [vmem:[%s5523_s10 + $0x84] ss:$16 sps:$4 sm:$0xff]  }
 0x1e1   : > { %v4871_v30 = vld [vmem:[%s5523_s10 + $0x2c0] ss:$16 sps:$4 sm:$0xff]  }
 0x1e2   : > { %2159 = vmatpush2.bf16.msra.mxu0 %v4758_v0  ;;  %v4847_v0 = vld [vmem:[%s5523_s10 + $0x80] ss:$16 sps:$4 sm:$0xff]  }
 0x1e3   : > { %2249 = vmatpush1.bf16.msra.mxu1 %v4755_v28  ;;  %2160 = vmatprep.subr.bf16.mxu0 %v4759_v29  ;;  %v4865_v28 = vld [vmem:[%s5523_s10 + $0x2e0] ss:$16 sps:$4 sm:$0xff]   ;;  %v4852_v29 = vld [vmem:[%s5523_s10 + $0x64] ss:$16 sps:$4 sm:$0xff]  }
 0x1e4   : > { %2250 = vmatprep.subr.bf16.mxu1 %v4763_v33  ;;  %v4879_v33 = vld [vmem:[%s5523_s10 + $0x2a4] ss:$16 sps:$4 sm:$0xff]  }
 0x1e6   : > { %2161 = vmatpush2.bf16.msra.mxu0 %v4764_v35  ;;  %v4855_v35 = vld [vmem:[%s5523_s10 + $0x44] ss:$16 sps:$4 sm:$0xff]  }
 0x1e7   : > { %2251 = vmatpush1.bf16.msra.mxu1 %v4761_v34  ;;  %2162 = vmatprep.subr.bf16.mxu0 %v4765_v37  ;;  %v4850_v34 = vld [vmem:[%s5523_s10 + $0x60] ss:$16 sps:$4 sm:$0xff]  }
 0x1e8   : > { %2252 = vmatprep.subr.bf16.mxu1 %v4769_v8  ;;  %v4877_v37 = vld [vmem:[%s5523_s10 + $0x2a0] ss:$16 sps:$4 sm:$0xff]   ;;  %v4885_v8 = vld [vmem:[%s5523_s10 + $0x284] ss:$16 sps:$4 sm:$0xff]  }
 0x1ea   : > { %2163 = vmatpush2.bf16.msra.mxu0 %v4770_v39  ;;  %v4858_v39 = vld [vmem:[%s5523_s10 + $0x24] ss:$16 sps:$4 sm:$0xff]  }
 0x1eb   : > { %2253 = vmatpush1.bf16.msra.mxu1 %v4767_v38  ;;  %2164 = vmatprep.subr.bf16.mxu0 %v4771_v41  ;;  %v4853_v38 = vld [vmem:[%s5523_s10 + $0x40] ss:$16 sps:$4 sm:$0xff]  }
 0x1ec   : > { %2254 = vmatprep.subr.bf16.mxu1 %v4775_v1  ;;  %v4883_v41 = vld [vmem:[%s5523_s10 + $0x280] ss:$16 sps:$4 sm:$0xff]   ;;  %v4891_v1 = vld [vmem:[%s5523_s10 + $0x264] ss:$16 sps:$4 sm:$0xff]  }
 0x1ee   : > { %2165 = vmatpush2.bf16.msra.mxu0 %v4776_v40  ;;  %v4889_v40 = vld [vmem:[%s5523_s10 + $0x260] ss:$16 sps:$4 sm:$0xff]  }
 0x1ef   : > { %2255 = vmatpush1.bf16.msra.mxu1 %v4773_v44  ;;  %2166 = vmatprep.subr.bf16.mxu0 %v4777_v9  ;;  %v4861_v44 = vld [vmem:[%s5523_s10 + $0x4] ss:$16 sps:$4 sm:$0xff]   ;;  %v4859_v9 = vld [vmem:[%s5523_s10] ss:$16 sps:$4 sm:$0xff]  }
 0x1f0   : > { %2256 = vmatprep.subr.bf16.mxu1 %v4781_v59  ;;  %v4864_v59 = vld [vmem:[%s5523_s10 + $0x1e4] ss:$16 sps:$4 sm:$0xff]  }
 0x1f2   : > { %2167 = vmatpush2.bf16.msra.mxu0 %v4782_v45  ;;  %v4870_v45 = vld [vmem:[%s5523_s10 + $0x1c4] ss:$16 sps:$4 sm:$0xff]  }
 0x1f3   : > { %2257 = vmatpush1.bf16.msra.mxu1 %v4779_v32  ;;  %2295 = vmatprep.subr.bf16.mxu0 %v4791_v24  ;;  %v4862_v32 = vld [vmem:[%s5523_s10 + $0x1e0] ss:$16 sps:$4 sm:$0xff]  }
 0x1f4   : > { %2258 = vmatprep.subr.bf16.mxu1 %v4788_v46  ;;  %v4897_v46 = vld [vmem:[%s5523_s10 + $0x244] ss:$16 sps:$4 sm:$0xff]   ;;  %v4868_v24 = vld [vmem:[%s5523_s10 + $0x1c0] ss:$16 sps:$4 sm:$0xff]  }
 0x1f5   : > { %2169 = vmatmul.mubr.bf16.vlgmr.msra.gmra.mxu0 %v5750_v26 }
 0x1f6   : > { %2296 = vmatpush1.bf16.msra.mxu0 %v4789_v31  ;;  %2178 = vmatprep.mubr.bf16.mxu0 %v5756_v2  ;;  %v4903_v31 = vld [vmem:[%s5523_s10 + $0x224] ss:$16 sps:$4 sm:$0xff]  }
 0x1f7   : > { %2259 = vmatpush2.bf16.msra.mxu1 %v4786_v47  ;;  %2297 = vmatprep.subr.bf16.mxu0 %v4797_v48  ;;  %v4876_v47 = vld [vmem:[%s5523_s10 + $0x1a4] ss:$16 sps:$4 sm:$0xff]   ;;  %v4901_v48 = vld [vmem:[%s5523_s10 + $0x220] ss:$16 sps:$4 sm:$0xff]  }
 0x1f8   : > { %2260 = vmatprep.subr.bf16.mxu1 %v4794_v36  ;;  %v4874_v36 = vld [vmem:[%s5523_s10 + $0x1a0] ss:$16 sps:$4 sm:$0xff]  }
 0x1fa   : > { %2298 = vmatpush1.bf16.msra.mxu0 %v4795_v50  ;;  %v4880_v50 = vld [vmem:[%s5523_s10 + $0x180] ss:$16 sps:$4 sm:$0xff]  }
 0x1fb   : > { %2261 = vmatpush2.bf16.msra.mxu1 %v4792_v49  ;;  %2299 = vmatprep.subr.bf16.mxu0 %v4806_v53  ;;  %v4909_v49 = vld [vmem:[%s5523_s10 + $0x204] ss:$16 sps:$4 sm:$0xff]  }
 0x1fc   : > { %2262 = vmatprep.subr.bf16.mxu1 %v4803_v52  ;;  %v4907_v52 = vld [vmem:[%s5523_s10 + $0x200] ss:$16 sps:$4 sm:$0xff]   ;;  %v4888_v53 = vld [vmem:[%s5523_s10 + $0x164] ss:$16 sps:$4 sm:$0xff]  }
 0x1fd   : > { %2179 = vmatmul.mubr.bf16.gmra.mxu0 %v5764_v6 }
 0x1fe   : > { %2300 = vmatpush1.bf16.msra.mxu0 %v4804_v7  ;;  %2327 = vmatprep.mubr.bf16.mxu0 %v5178_v27  ;;  %v4910_v7 = vld [vmem:[%s5523_s10 + $0x3e0] ss:$16 sps:$4 sm:$0xff]  }
 0x1ff   : > { %2263 = vmatpush2.bf16.msra.mxu1 %v4801_v3  ;;  %2301 = vmatprep.subr.bf16.mxu0 %v4813_v54  ;;  %v4886_v3 = vld [vmem:[%s5523_s10 + $0x160] ss:$16 sps:$4 sm:$0xff]  }
 0x200   : > { %2264 = vmatprep.subr.bf16.mxu1 %v4810_v22  ;;  %v4894_v22 = vld [vmem:[%s5523_s10 + $0x144] ss:$16 sps:$4 sm:$0xff]   ;;  %v4892_v54 = vld [vmem:[%s5523_s10 + $0x140] ss:$16 sps:$4 sm:$0xff]  }
 0x202   : > { %2302 = vmatpush1.bf16.msra.mxu0 %v4811_v61  ;;  %v4900_v61 = vld [vmem:[%s5523_s10 + $0x124] ss:$16 sps:$4 sm:$0xff]  }
 0x203   : > { %2265 = vmatpush2.bf16.msra.mxu1 %v4808_v60  ;;  %2303 = vmatprep.subr.bf16.mxu0 %v4819_v56  ;;  %v4918_v60 = vld [vmem:[%s5523_s10 + $0x3c4] ss:$16 sps:$4 sm:$0xff]   ;;  %v4898_v56 = vld [vmem:[%s5523_s10 + $0x120] ss:$16 sps:$4 sm:$0xff]  }
 0x204   : > { %2266 = vmatprep.subr.bf16.mxu1 %v4816_v55  ;;  %v4916_v55 = vld [vmem:[%s5523_s10 + $0x3c0] ss:$16 sps:$4 sm:$0xff]  }
 0x206   : > { %2304 = vmatpush1.bf16.msra.mxu0 %v4817_v51  ;;  %v4906_v51 = vld [vmem:[%s5523_s10 + $0x104] ss:$16 sps:$4 sm:$0xff]  }
 0x207   : > { %2267 = vmatpush2.bf16.msra.mxu1 %v4814_v43  ;;  %2305 = vmatprep.subr.bf16.mxu0 %v4825_v4  ;;  %v4924_v43 = vld [vmem:[%s5523_s10 + $0x3a4] ss:$16 sps:$4 sm:$0xff]   ;;  %v4928_v4 = vld [vmem:[%s5523_s10 + $0x380] ss:$16 sps:$4 sm:$0xff]  }
 0x208   : > { %2268 = vmatprep.subr.bf16.mxu1 %v4822_v62  ;;  %v4922_v62 = vld [vmem:[%s5523_s10 + $0x3a0] ss:$16 sps:$4 sm:$0xff]  }
 0x20a   : > { %2306 = vmatpush1.bf16.msra.mxu0 %v4823_v10  ;;  %v4904_v10 = vld [vmem:[%s5523_s10 + $0x100] ss:$16 sps:$4 sm:$0xff]  }
 0x20b   : > { %2269 = vmatpush2.bf16.msra.mxu1 %v4820_v57  ;;  %2307 = vmatprep.subr.bf16.mxu0 %v4831_v58  ;;  %v4930_v57 = vld [vmem:[%s5523_s10 + $0x384] ss:$16 sps:$4 sm:$0xff]   ;;  %v4934_v58 = vld [vmem:[%s5523_s10 + $0x360] ss:$16 sps:$4 sm:$0xff]  }
 0x20c   : > { %2270 = vmatprep.subr.bf16.mxu1 %v4828_v23  ;;  %v4915_v23 = vld [vmem:[%s5523_s10 + $0xec] ss:$16 sps:$4 sm:$0xff]  }
 0x20e   : > { %2308 = vmatpush1.bf16.msra.mxu0 %v4829_v63  ;;  %v4942_v63 = vld [vmem:[%s5523_s10 + $0x344] ss:$16 sps:$4 sm:$0xff]  }
 0x20f   : > { %2271 = vmatpush2.bf16.msra.mxu1 %v4826_v12  ;;  %2309 = vmatprep.subr.bf16.mxu0 %v4837_v17  ;;  %v4936_v12 = vld [vmem:[%s5523_s10 + $0x364] ss:$16 sps:$4 sm:$0xff]  }
 0x210   : > { %2272 = vmatprep.subr.bf16.mxu1 %v4834_v16  ;;  %v4940_v16 = vld [vmem:[%s5523_s10 + $0x340] ss:$16 sps:$4 sm:$0xff]   ;;  %v4948_v17 = vld [vmem:[%s5523_s10 + $0x324] ss:$16 sps:$4 sm:$0xff]  }
 0x212   : > { %2310 = vmatpush1.bf16.msra.mxu0 %v4835_v18  ;;  %v4954_v18 = vld [vmem:[%s5523_s10 + $0x304] ss:$16 sps:$4 sm:$0xff]  }
 0x213   : > { %2273 = vmatpush2.bf16.msra.mxu1 %v4832_v15  ;;  %3156 = vmatprep.subr.bf16.mxu0 %v4840_v11  ;;  %v4946_v15 = vld [vmem:[%s5523_s10 + $0x320] ss:$16 sps:$4 sm:$0xff]  }
 0x214   : > { %v4952_v11 = vld [vmem:[%s5523_s10 + $0x300] ss:$16 sps:$4 sm:$0xff]  }
 0x215   : > { %2328 = vmatmul.mubr.bf16.vlgmr.msra.gmra.mxu0 %v5711_v14  ;;  %v4873_v14 = vld [vmem:[%s5523_s10 + $0x2c4] ss:$16 sps:$4 sm:$0xff]  }
 0x216   : > { %2275 = vmatmul.mubr.bf16.vlgmr.msra.gmra.mxu1 %v5750_v26  ;;  %2337 = vmatprep.mubr.bf16.mxu0 %v5178_v27  ;;  %v4867_v27 = vld [vmem:[%s5523_s10 + $0x2e4] ss:$16 sps:$4 sm:$0xff]   ;;  %v4895_v26 = vld [vmem:[%s5523_s10 + $0x240] ss:$16 sps:$4 sm:$0xff]  }
 0x217   : > { %2284 = vmatprep.mubr.bf16.mxu1 %v5756_v2  ;;  %3157 = vmatpush1.bf16.msra.mxu0 %v4838_v13  ;;  %v4882_v2 = vld [vmem:[%s5523_s10 + $0x184] ss:$16 sps:$4 sm:$0xff]   ;;  %v4963_v13 = vld [vmem:[%s5523_s10 + $0x2ec] ss:$16 sps:$4 sm:$0xff]  }
 0x218   : > { %3158 = vmatprep.subr.bf16.mxu0 %v4843_v20  ;;  %3209 = vmatprep.subr.bf16.mxu1 %v4867_v27 }
 0x219   : > { %3210 = vmatpush1.bf16.msra.mxu1 %v4865_v28 }
 0x21a   : > { %3211 = vmatprep.subr.bf16.mxu1 %v4873_v14  ;;  %v5871_v14 = vld [vmem:[%s548_s21] sm:$0xf] }
 0x21b   : > { %3159 = vmatpush1.bf16.msra.mxu0 %v4841_v5  ;;  %v1604_v5 = vlaneseq }
 0x21c   : > { %3160 = vmatprep.subr.bf16.mxu0 %v4846_v19 }
 0x21d   : > { %2338 = vmatmul.mubr.bf16.gmra.mxu0 %v5739_v42  ;;  %3212 = vmatpush1.bf16.msra.mxu1 %v4871_v30  ;;  %v4856_v42 = vld [vmem:[%s5523_s10 + $0x20] ss:$16 sps:$4 sm:$0xff]  }
 0x21e   : > { %2285 = vmatmul.mubr.bf16.gmra.mxu1 %v5764_v6  ;;  %3213 = vmatprep.subr.bf16.mxu1 %v4879_v33  ;;  %v4912_v6 = vld [vmem:[%s5523_s10 + $0x3e4] ss:$16 sps:$4 sm:$0xff]  }
 0x21f   : > { %3161 = vmatpush1.bf16.msra.mxu0 %v4844_v21  ;;  %v5862_v21 = vshrl.u32 %v1604_v5, 7 }
 0x220   : > { %3162 = vmatprep.subr.bf16.mxu0 %v4849_v25 }
 0x221   : > { %3214 = vmatpush1.bf16.msra.mxu1 %v4877_v37  ;;  %v1610_v25 = vsub.s32 1, %v5862_v21  ;;  %v1606_v27 = vsub.s32 0, %v5862_v21 }
 0x222   : > { %3215 = vmatprep.subr.bf16.mxu1 %v4885_v8 }
 0x223   : > { %3163 = vmatpush1.bf16.msra.mxu0 %v4847_v0  ;;  %v1611_v0 = vrot.slane %v5871_v14, %v1610_v25  ;;  %v1607_v30 = vrot.slane %v5871_v14, %v1606_v27 }
 0x224   : > { %3164 = vmatprep.subr.bf16.mxu0 %v4852_v29 }
 0x225   : > { %3216 = vmatpush1.bf16.msra.mxu1 %v4883_v41 }
 0x226   : > { %3217 = vmatprep.subr.bf16.mxu1 %v4891_v1 }
 0x227   : > { %3165 = vmatpush1.bf16.msra.mxu0 %v4850_v34 }
 0x228   : > { %3166 = vmatprep.subr.bf16.mxu0 %v4855_v35 }
 0x229   : > { %3218 = vmatpush1.bf16.msra.mxu1 %v4889_v40 }
 0x22a   : > { %3219 = vmatprep.subr.bf16.mxu1 %v4897_v46 }
 0x22b   : > { %3167 = vmatpush1.bf16.msra.mxu0 %v4853_v38 }
 0x22c   : > { %3168 = vmatprep.subr.bf16.mxu0 %v4858_v39 }
 0x22d   : > { %3220 = vmatpush1.bf16.msra.mxu1 %v4895_v26 }
 0x22e   : > { %3221 = vmatprep.subr.bf16.mxu1 %v4903_v31 }
 0x22f   : > { %3169 = vmatpush1.bf16.msra.mxu0 %v4856_v42 }
 0x230   : > { %3170 = vmatprep.subr.bf16.mxu0 %v4861_v44 }
 0x231   : > { %3222 = vmatpush1.bf16.msra.mxu1 %v4901_v48 }
 0x232   : > { %3223 = vmatprep.subr.bf16.mxu1 %v4909_v49 }
 0x233   : > { %3171 = vmatpush1.bf16.msra.mxu0 %v4859_v9 }
 0x234   : > { %3172 = vmatprep.subr.bf16.mxu0 %v4864_v59 }
 0x235   : > { %3224 = vmatpush1.bf16.msra.mxu1 %v4907_v52 }
 0x236   : > { %3225 = vmatprep.subr.bf16.mxu1 %v4912_v6  ;;  %v4913_v6 = vld [vmem:[%s5523_s10 + $0xe8] ss:$16 sps:$4 sm:$0xff]  }
 0x237   : > { %3173 = vmatpush2.bf16.msra.mxu0 %v4862_v32 }
 0x238   : > { %3174 = vmatprep.subr.bf16.mxu0 %v4870_v45 }
 0x239   : > { %3226 = vmatpush2.bf16.msra.mxu1 %v4910_v7 }
 0x23a   : > { %3227 = vmatprep.subr.bf16.mxu1 %v4918_v60 }
 0x23b   : > { %3175 = vmatpush2.bf16.msra.mxu0 %v4868_v24 }
 0x23c   : > { %3176 = vmatprep.subr.bf16.mxu0 %v4876_v47 }
 0x23d   : > { %3228 = vmatpush2.bf16.msra.mxu1 %v4916_v55 }
 0x23e   : > { %3229 = vmatprep.subr.bf16.mxu1 %v4924_v43 }
 0x23f   : > { %3177 = vmatpush2.bf16.msra.mxu0 %v4874_v36 }
 0x240   : > { %3178 = vmatprep.subr.bf16.mxu0 %v4882_v2 }
 0x241   : > { %3230 = vmatpush2.bf16.msra.mxu1 %v4922_v62  ;;  %v4919_v62 = vld [vmem:[%s5523_s10 + $0xc8] ss:$16 sps:$4 sm:$0xff]  }
 0x242   : > { %3231 = vmatprep.subr.bf16.mxu1 %v4930_v57 }
 0x243   : > { %3179 = vmatpush2.bf16.msra.mxu0 %v4880_v50 }
 0x244   : > { %3180 = vmatprep.subr.bf16.mxu0 %v4888_v53 }
 0x245   : > { %3232 = vmatpush2.bf16.msra.mxu1 %v4928_v4  ;;  %v4927_v4 = vld [vmem:[%s5523_s10 + $0xac] ss:$16 sps:$4 sm:$0xff]  }
 0x246   : > { %3233 = vmatprep.subr.bf16.mxu1 %v4936_v12  ;;  %v4933_v12 = vld [vmem:[%s5523_s10 + $0x8c] ss:$16 sps:$4 sm:$0xff]  }
 0x247   : > { %3181 = vmatpush2.bf16.msra.mxu0 %v4886_v3 }
 0x248   : > { %3182 = vmatprep.subr.bf16.mxu0 %v4894_v22 }
 0x249   : > { %3234 = vmatpush2.bf16.msra.mxu1 %v4934_v58  ;;  %v4925_v58 = vld [vmem:[%s5523_s10 + $0xa8] ss:$16 sps:$4 sm:$0xff]  }
 0x24a   : > { %3235 = vmatprep.subr.bf16.mxu1 %v4942_v63  ;;  %v4931_v63 = vld [vmem:[%s5523_s10 + $0x88] ss:$16 sps:$4 sm:$0xff]  }
 0x24b   : > { %3183 = vmatpush2.bf16.msra.mxu0 %v4892_v54  ;;  %v4921_v54 = vld [vmem:[%s5523_s10 + $0xcc] ss:$16 sps:$4 sm:$0xff]  }
 0x24c   : > { %3184 = vmatprep.subr.bf16.mxu0 %v4900_v61 }
 0x24d   : > { %3236 = vmatpush2.bf16.msra.mxu1 %v4940_v16  ;;  %v4939_v16 = vld [vmem:[%s5523_s10 + $0x6c] ss:$16 sps:$4 sm:$0xff]  }
 0x24e   : > { %3237 = vmatprep.subr.bf16.mxu1 %v4948_v17  ;;  %v1618_v17 = vsub.s32 3, %v5862_v21 }
 0x24f   : > { %3185 = vmatpush2.bf16.msra.mxu0 %v4898_v56 }
 0x250   : > { %3186 = vmatprep.subr.bf16.mxu0 %v4906_v51 }
 0x251   : > { %3238 = vmatpush2.bf16.msra.mxu1 %v4946_v15  ;;  %v1614_v15 = vsub.s32 2, %v5862_v21 }
 0x252   : > { %3239 = vmatprep.subr.bf16.mxu1 %v4954_v18  ;;  %v4937_v18 = vld [vmem:[%s5523_s10 + $0x68] ss:$16 sps:$4 sm:$0xff]  }
 0x253   : > { %3187 = vmatpush2.bf16.msra.mxu0 %v4904_v10 }
 0x254   : > { %3262 = vmatprep.subr.bf16.mxu0 %v4915_v23 }
 0x255   : > { %3240 = vmatpush2.bf16.msra.mxu1 %v4952_v11  ;;  %v4945_v11 = vld [vmem:[%s5523_s10 + $0x4c] ss:$16 sps:$4 sm:$0xff]  }
 0x256   : > { %3315 = vmatprep.subr.bf16.mxu1 %v4963_v13  ;;  %v1619_v13 = vrot.slane %v5871_v14, %v1618_v17 }
 0x296   : > { %v2223_v20 = vpop.f32.mrf.mxu1 }
 0x298   : > { %v2225_v19 = vpop.f32.mrf.mxu1 }
 0x29a   : > { %v2227_v28 = vpop.f32.mrf.mxu1 }
 0x29c   : > { %v2229_v29 = vpop.f32.mrf.mxu1 }
 0x29e   : > { %v2233_v35 = vpop.f32.mrf.mxu1 }
 0x2a0   : > { %v2235_v1 = vpop.f32.mrf.mxu1 }
 0x2a2   : > { %v2237_v26 = vpop.f32.mrf.mxu1 }
 0x2a4   : > { %v2239_v22 = vpop.f32.mrf.mxu1 }
 0x2b5   : > { %v2170_v33 = vpop.f32.mrf.mxu0 }
 0x2b6   : > { %v2171_v8 = vadd.f32 %v2170_v33, %v1607_v30 }
 0x2b7   : > { %v2172_v34 = vpop.f32.mrf.mxu0 }
 0x2b8   : > { %v2173_v37 = vadd.f32 %v2172_v34, %v1611_v0  ;;  %v2224_v9 = vadd.f32 %v2223_v20, %v2171_v8  ;;  %v1615_v20 = vrot.slane %v5871_v14, %v1614_v15  ;;  %v4957_v14 = vld [vmem:[%s5523_s10 + $0xc] ss:$16 sps:$4 sm:$0xff]  }
 0x2b9   : > { %v2174_v38 = vpop.f32.mrf.mxu0 }
 0x2ba   : > { %v2175_v39 = vadd.f32 %v2174_v38, %v1607_v30  ;;  %v2226_v42 = vadd.f32 %v2225_v19, %v2173_v37  ;;  %v2348_v48 = vmax.f32 %v2224_v9, 0.0  ;;  %v4949_v38 = vld [vmem:[%s5523_s10 + $0x28] ss:$16 sps:$4 sm:$0xff]  }
 0x2bb   : > { %v2176_v41 = vpop.f32.mrf.mxu0 }
 0x2bc   : > { %v2228_v44 = vadd.f32 %v2227_v28, %v2175_v39  ;;  %v2177_v40 = vadd.f32 %v2176_v41, %v1611_v0  ;;  %v2349_v47 = vmax.f32 %v2226_v42, 0.0  ;;  %v4943_v28 = vld [vmem:[%s5523_s10 + $0x48] ss:$16 sps:$4 sm:$0xff]  }
 0x2bd   : > { %v2180_v59 = vpop.f32.mrf.mxu0 }
 0x2be   : > { %v2230_v32 = vadd.f32 %v2229_v29, %v2177_v40  ;;  %v2181_v45 = vadd.f32 %v2180_v59, %v1607_v30  ;;  %v2352_v46 = vmax.f32 %v2228_v44, 0.0 }
 0x2bf   : > { %v2182_v24 = vpop.f32.mrf.mxu0 }
 0x2c0   : > { %v2353_v31 = vmax.f32 %v2230_v32, 0.0  ;;  %v2183_v36 = vadd.f32 %v2182_v24, %v1611_v0  ;;  %v2234_v2 = vadd.f32 %v2233_v35, %v2181_v45  ;;  %v5880_v3 = vpack.c.bf16 %v2352_v46, %v2348_v48  ;;  %v4955_v46 = vld [vmem:[%s5523_s10 + $0x8] ss:$16 sps:$4 sm:$0xff]  }
 0x2c1   : > { %v2184_v49 = vpop.f32.mrf.mxu0 }
 0x2c2   : > { %v2185_v50 = vadd.f32 %v2184_v49, %v1607_v30  ;;  %v2236_v52 = vadd.f32 %v2235_v1, %v2183_v36  ;;  %v2381_v53 = vpack.c.bf16 %v2353_v31, %v2349_v47  ;;  %v2356_v55 = vmax.f32 %v2234_v2, 0.0  ;;  %v4951_v30 = vld [vmem:[%s5523_s10 + $0x2c] ss:$16 sps:$4 sm:$0xff]  }
 0x2c3   : > { %v2186_v7 = vpop.f32.mrf.mxu0  ;;  %v4960_v31 = vld [vmem:[%s5523_s10 + $0x1ec] ss:$16 sps:$4 sm:$0xff]  }
 0x2c4   : > { %v2187_v60 = vadd.f32 %v2186_v7, %v1611_v0  ;;  %v2238_v61 = vadd.f32 %v2237_v26, %v2185_v50  ;;  %3188 = vmatprep.mubr.bf16.mxu0 %v2381_v53  ;;  %v2357_v56 = vmax.f32 %v2236_v52, 0.0 }
 0x2c5   : > { %3189 = vmatmul.mubr.bf16.vlgmr.msra.gmra.mxu0 %v5880_v3 }
 0x2c6   : > { %v2360_v43 = vmax.f32 %v2238_v61, 0.0  ;;  %v2240_v51 = vadd.f32 %v2239_v22, %v2187_v60  ;;  %3263 = vmatpush1.bf16.msra.mxu0 %v4913_v6  ;;  %v4961_v60 = vld [vmem:[%s5523_s10 + $0x2e8] ss:$16 sps:$4 sm:$0xff]  }
 0x2c7   : > { %3264 = vmatprep.subr.bf16.mxu0 %v4921_v54  ;;  %v4958_v54 = vld [vmem:[%s5523_s10 + $0x1e8] ss:$16 sps:$4 sm:$0xff]  }
 0x2c8   : > { %v2361_v57 = vmax.f32 %v2240_v51, 0.0  ;;  %v5886_v10 = vpack.c.bf16 %v2360_v43, %v2356_v55  ;;  %v4966_v43 = vld [vmem:[%s5523_s10 + $0x1cc] ss:$16 sps:$4 sm:$0xff]  }
 0x2c9   : > { %v4969_v51 = vld [vmem:[%s5523_s10 + $0x2cc] ss:$16 sps:$4 sm:$0xff]  }
 0x2ca   : > { %v5888_v23 = vpack.c.bf16 %v2361_v57, %v2357_v56  ;;  %3265 = vmatpush1.bf16.msra.mxu0 %v4919_v62 }
 0x2cb   : > { %3266 = vmatprep.subr.bf16.mxu0 %v4927_v4 }
 0x2cc   : > { %3198 = vmatprep.mubr.bf16.mxu0 %v5888_v23 }
 0x2cd   : > { %3199 = vmatmul.mubr.bf16.gmra.mxu0 %v5886_v10 }
 0x2ce   : > { %3267 = vmatpush1.bf16.msra.mxu0 %v4925_v58  ;;  %3294 = vmatprep.mubr.bf16.mxu0 %v2381_v53 }
 0x2cf   : > { %3268 = vmatprep.subr.bf16.mxu0 %v4933_v12 }
 0x2d2   : > { %3269 = vmatpush1.bf16.msra.mxu0 %v4931_v63 }
 0x2d3   : > { %3270 = vmatprep.subr.bf16.mxu0 %v4939_v16  ;;  %v4964_v16 = vld [vmem:[%s5523_s10 + $0x1c8] ss:$16 sps:$4 sm:$0xff]  }
 0x2d5   : > { %v2329_v19 = vpop.f32.mrf.mxu0 }
 0x2d6   : > { %v2276_v5 = vpop.f32.mrf.mxu1  ;;  %3271 = vmatpush1.bf16.msra.mxu0 %v4937_v18  ;;  %v4967_v18 = vld [vmem:[%s5523_s10 + $0x2c8] ss:$16 sps:$4 sm:$0xff]  }
 0x2d7   : > { %v2331_v29 = vpop.f32.mrf.mxu0  ;;  %3272 = vmatprep.subr.bf16.mxu0 %v4945_v11  ;;  %v2277_v34 = vadd.f32 %v2276_v5, %v1615_v20  ;;  %v4972_v11 = vld [vmem:[%s5523_s10 + $0x1ac] ss:$16 sps:$4 sm:$0xff]  }
 0x2d8   : > { %v2278_v0 = vpop.f32.mrf.mxu1 }
 0x2d9   : > { %v2279_v33 = vadd.f32 %v2278_v0, %v1619_v13  ;;  %v2333_v37 = vpop.f32.mrf.mxu0  ;;  %v2330_v40 = vadd.f32 %v2329_v19, %v2277_v34  ;;  %v4973_v0 = vld [vmem:[%s5523_s10 + $0x2a8] ss:$16 sps:$4 sm:$0xff]  }
 0x2da   : > { %v2280_v35 = vpop.f32.mrf.mxu1  ;;  %3273 = vmatpush1.bf16.msra.mxu0 %v4943_v28  ;;  %v4970_v28 = vld [vmem:[%s5523_s10 + $0x1a8] ss:$16 sps:$4 sm:$0xff]  }
 0x2db   : > { %v2281_v8 = vadd.f32 %v2280_v35, %v1615_v20  ;;  %v2335_v41 = vpop.f32.mrf.mxu0  ;;  %3274 = vmatprep.subr.bf16.mxu0 %v4951_v30  ;;  %v2332_v1 = vadd.f32 %v2331_v29, %v2279_v33  ;;  %v2350_v49 = vmax.f32 %v2330_v40, 0.0  ;;  %v4978_v29 = vld [vmem:[%s5523_s10 + $0x18c] ss:$16 sps:$4 sm:$0xff]   ;;  %v4976_v33 = vld [vmem:[%s5523_s10 + $0x188] ss:$16 sps:$4 sm:$0xff]  }
 0x2dc   : > { %v2282_v39 = vpop.f32.mrf.mxu1  ;;  %v4981_v30 = vld [vmem:[%s5523_s10 + $0x28c] ss:$16 sps:$4 sm:$0xff]   ;;  %v4979_v34 = vld [vmem:[%s5523_s10 + $0x288] ss:$16 sps:$4 sm:$0xff]  }
 0x2dd   : > { %v2334_v42 = vadd.f32 %v2333_v37, %v2281_v8  ;;  %v2283_v44 = vadd.f32 %v2282_v39, %v1619_v13  ;;  %v2339_v59 = vpop.f32.mrf.mxu0  ;;  %v2351_v36 = vmax.f32 %v2332_v1, 0.0  ;;  %v4984_v35 = vld [vmem:[%s5523_s10 + $0x16c] ss:$16 sps:$4 sm:$0xff]   ;;  %v4982_v8 = vld [vmem:[%s5523_s10 + $0x168] ss:$16 sps:$4 sm:$0xff]  }
 0x2de   : > { %v2286_v9 = vpop.f32.mrf.mxu1  ;;  %3275 = vmatpush1.bf16.msra.mxu0 %v4949_v38  ;;  %v4987_v37 = vld [vmem:[%s5523_s10 + $0x26c] ss:$16 sps:$4 sm:$0xff]   ;;  %v4985_v38 = vld [vmem:[%s5523_s10 + $0x268] ss:$16 sps:$4 sm:$0xff]  }
 0x2df   : > { %v2336_v32 = vadd.f32 %v2335_v41, %v2283_v44  ;;  %v2287_v45 = vadd.f32 %v2286_v9, %v1615_v20  ;;  %v2354_v24 = vmax.f32 %v2334_v42, 0.0  ;;  %3276 = vmatprep.subr.bf16.mxu0 %v4957_v14  ;;  %v2341_v47 = vpop.f32.mrf.mxu0  ;;  %v4990_v39 = vld [vmem:[%s5523_s10 + $0x14c] ss:$16 sps:$4 sm:$0xff]   ;;  %v4988_v14 = vld [vmem:[%s5523_s10 + $0x148] ss:$16 sps:$4 sm:$0xff]  }
 0x2e0   : > { %v2288_v26 = vpop.f32.mrf.mxu1  ;;  %v4993_v41 = vld [vmem:[%s5523_s10 + $0x24c] ss:$16 sps:$4 sm:$0xff]   ;;  %v4991_v1 = vld [vmem:[%s5523_s10 + $0x248] ss:$16 sps:$4 sm:$0xff]  }
 0x2e1   : > { %v2355_v48 = vmax.f32 %v2336_v32, 0.0  ;;  %v2289_v2 = vadd.f32 %v2288_v26, %v1619_v13  ;;  %v2340_v50 = vadd.f32 %v2339_v59, %v2287_v45  ;;  %v2343_v53 = vpop.f32.mrf.mxu0  ;;  %v5914_v61 = vpack.c.bf16 %v2354_v24, %v2350_v49  ;;  %v4996_v42 = vld [vmem:[%s5523_s10 + $0x12c] ss:$16 sps:$4 sm:$0xff]   ;;  %v4994_v40 = vld [vmem:[%s5523_s10 + $0x128] ss:$16 sps:$4 sm:$0xff]  }
 0x2e2   : > { %v2290_v52 = vpop.f32.mrf.mxu1  ;;  %3277 = vmatpush1.bf16.msra.mxu0 %v4955_v46  ;;  %v4999_v44 = vld [vmem:[%s5523_s10 + $0x22c] ss:$16 sps:$4 sm:$0xff]   ;;  %v4997_v9 = vld [vmem:[%s5523_s10 + $0x228] ss:$16 sps:$4 sm:$0xff]  }
 0x2e3   : > { %v2383_v6 = vpack.c.bf16 %v2355_v48, %v2351_v36  ;;  %v2291_v7 = vadd.f32 %v2290_v52, %v1615_v20  ;;  %v2342_v22 = vadd.f32 %v2341_v47, %v2289_v2  ;;  %3278 = vmatprep.subr.bf16.mxu0 %v4960_v31  ;;  %v2345_v56 = vpop.f32.mrf.mxu0  ;;  %v2358_v57 = vmax.f32 %v2340_v50, 0.0  ;;  %v5002_v59 = vld [vmem:[%s5523_s10 + $0x10c] ss:$16 sps:$4 sm:$0xff]   ;;  %v5000_v45 = vld [vmem:[%s5523_s10 + $0x108] ss:$16 sps:$4 sm:$0xff]  }
 0x2e4   : > { %v2292_v55 = vpop.f32.mrf.mxu1  ;;  %v5005_v32 = vld [vmem:[%s5523_s10 + $0x20c] ss:$16 sps:$4 sm:$0xff]   ;;  %v5003_v46 = vld [vmem:[%s5523_s10 + $0x208] ss:$16 sps:$4 sm:$0xff]  }
 0x2e5   : > { %v2293_v62 = vadd.f32 %v2292_v55, %v1619_v13  ;;  %v2344_v4 = vadd.f32 %v2343_v53, %v2291_v7  ;;  %3241 = vmatprep.mubr.bf16.mxu1 %v2383_v6  ;;  %v2359_v58 = vmax.f32 %v2342_v22, 0.0  ;;  %v4975_v13 = vld [vmem:[%s5523_s10 + $0x2ac] ss:$16 sps:$4 sm:$0xff]   ;;  %v5006_v26 = vld [vmem:[%s5523_s10 + $0x3e8] ss:$16 sps:$4 sm:$0xff]  }
 0x2e6   : > { %3242 = vmatmul.mubr.bf16.vlgmr.msra.gmra.mxu1 %v5914_v61  ;;  %3279 = vmatpush2.bf16.msra.mxu0 %v4958_v54  ;;  %v5008_v24 = vld [vmem:[%s5523_s10 + $0x3ec] ss:$16 sps:$4 sm:$0xff]   ;;  %v5009_v31 = vld [vmem:[%s5523_s10 + $0x3c8] ss:$16 sps:$4 sm:$0xff]  }
 0x2e7   : > { %v2362_v12 = vmax.f32 %v2344_v4, 0.0  ;;  %v2346_v63 = vadd.f32 %v2345_v56, %v2293_v62  ;;  %3316 = vmatpush1.bf16.msra.mxu1 %v4961_v60  ;;  %3280 = vmatprep.subr.bf16.mxu0 %v4966_v43  ;;  %v5011_v47 = vld [vmem:[%s5523_s10 + $0x3cc] ss:$16 sps:$4 sm:$0xff]   ;;  %v5012_v48 = vld [vmem:[%s5523_s10 + $0x3a8] ss:$16 sps:$4 sm:$0xff]  }
 0x2e8   : > { %3317 = vmatprep.subr.bf16.mxu1 %v4969_v51  ;;  %v5014_v36 = vld [vmem:[%s5523_s10 + $0x3ac] ss:$16 sps:$4 sm:$0xff]   ;;  %v5018_v49 = vld [vmem:[%s5523_s10 + $0x368] ss:$16 sps:$4 sm:$0xff]  }
 0x2e9   : > { %v2363_v20 = vmax.f32 %v2346_v63, 0.0  ;;  %v5923_v5 = vpack.c.bf16 %v2362_v12, %v2358_v57  ;;  %v5017_v2 = vld [vmem:[%s5523_s10 + $0x38c] ss:$16 sps:$4 sm:$0xff]   ;;  %v5021_v52 = vld [vmem:[%s5523_s10 + $0x348] ss:$16 sps:$4 sm:$0xff]  }
 0x2ea   : > { %3281 = vmatpush2.bf16.msra.mxu0 %v4964_v16  ;;  %v5023_v50 = vld [vmem:[%s5523_s10 + $0x34c] ss:$16 sps:$4 sm:$0xff]   ;;  %v2364_v56 = vld [vmem:[#allocation3 + $0x30] sm:$0xff]  ;;  %v2365_v4 = vld [vmem:[#allocation3] sm:$0xff] }
 0x2eb   : > { %v5925_v19 = vpack.c.bf16 %v2363_v20, %v2359_v58  ;;  %3318 = vmatpush1.bf16.msra.mxu1 %v4967_v18  ;;  %3282 = vmatprep.subr.bf16.mxu0 %v4972_v11  ;;  %v5026_v53 = vld [vmem:[%s5523_s10 + $0x32c] ss:$16 sps:$4 sm:$0xff]   ;;  %v2368_v63 = vld [vmem:[#allocation3 + $0x50] sm:$0xff] }
 0x2ec   : > { %3319 = vmatprep.subr.bf16.mxu1 %v4975_v13  ;;  %v5029_v7 = vld [vmem:[%s5523_s10 + $0x30c] ss:$16 sps:$4 sm:$0xff]  }
 0x2ed   : > { %3251 = vmatprep.mubr.bf16.mxu1 %v5925_v19  ;;  %v2369_v13 = vld [vmem:[#allocation3 + $0x68] sm:$0xff] }
 0x2ee   : > { %3252 = vmatmul.mubr.bf16.gmra.mxu1 %v5923_v5  ;;  %3283 = vmatpush2.bf16.msra.mxu0 %v4970_v28  ;;  %v2372_v28 = vld [vmem:[#allocation3 + $0x40] sm:$0xff] }
 0x2ef   : > { %3320 = vmatpush1.bf16.msra.mxu1 %v4973_v0  ;;  %3347 = vmatprep.mubr.bf16.mxu1 %v2383_v6  ;;  %v5024_v6 = vld [vmem:[%s5523_s10 + $0x328] ss:$16 sps:$4 sm:$0xff]  }
 0x2f0   : > { %3284 = vmatprep.subr.bf16.mxu0 %v4978_v29  ;;  %3321 = vmatprep.subr.bf16.mxu1 %v4981_v30 }
 0x2f2   : > { %3285 = vmatpush2.bf16.msra.mxu0 %v4976_v33 }
 0x2f3   : > { %3322 = vmatpush1.bf16.msra.mxu1 %v4979_v34  ;;  %3286 = vmatprep.subr.bf16.mxu0 %v4984_v35  ;;  %v2373_v34 = vld [vmem:[#allocation3 + $0x20] sm:$0xff] }
 0x2f4   : > { %3323 = vmatprep.subr.bf16.mxu1 %v4987_v37 }
 0x2f6   : > { %3287 = vmatpush2.bf16.msra.mxu0 %v4982_v8 }
 0x2f7   : > { %3324 = vmatpush1.bf16.msra.mxu1 %v4985_v38  ;;  %3288 = vmatprep.subr.bf16.mxu0 %v4990_v39  ;;  %v2376_v38 = vld [vmem:[#allocation3 + $0x60] sm:$0xff] }
 0x2f8   : > { %3325 = vmatprep.subr.bf16.mxu1 %v4993_v41 }
 0x2fa   : > { %3289 = vmatpush2.bf16.msra.mxu0 %v4988_v14 }
 0x2fb   : > { %3326 = vmatpush1.bf16.msra.mxu1 %v4991_v1  ;;  %3290 = vmatprep.subr.bf16.mxu0 %v4996_v42  ;;  %v2377_v42 = vld [vmem:[#allocation3 + $0x70] sm:$0xff] }
 0x2fc   : > { %3327 = vmatprep.subr.bf16.mxu1 %v4999_v44 }
 0x2fe   : > { %3291 = vmatpush2.bf16.msra.mxu0 %v4994_v40 }
 0x2ff   : > { %3328 = vmatpush1.bf16.msra.mxu1 %v4997_v9  ;;  %3292 = vmatprep.subr.bf16.mxu0 %v5002_v59 }
 0x300   : > { %3329 = vmatprep.subr.bf16.mxu1 %v5005_v32 }
 0x302   : > { %3293 = vmatpush2.bf16.msra.mxu0 %v5000_v45 }
 0x303   : > { %3330 = vmatpush1.bf16.msra.mxu1 %v5003_v46 }
 0x304   : > { %3331 = vmatprep.subr.bf16.mxu1 %v5008_v24 }
 0x305   : > { %3295 = vmatmul.mubr.bf16.vlgmr.msra.gmra.mxu0 %v5880_v3  ;;  %v5015_v3 = vld [vmem:[%s5523_s10 + $0x388] ss:$16 sps:$4 sm:$0xff]  }
 0x306   : > { %3304 = vmatprep.mubr.bf16.mxu0 %v5888_v23  ;;  %v5020_v23 = vld [vmem:[%s5523_s10 + $0x36c] ss:$16 sps:$4 sm:$0xff]  }
 0x307   : > { %3332 = vmatpush2.bf16.msra.mxu1 %v5006_v26  ;;  %v2366_v26 = vld [vmem:[#allocation3 + $0x58] sm:$0xff] }
 0x308   : > { %3333 = vmatprep.subr.bf16.mxu1 %v5011_v47 }
 0x30b   : > { %3334 = vmatpush2.bf16.msra.mxu1 %v5009_v31 }
 0x30c   : > { %3335 = vmatprep.subr.bf16.mxu1 %v5014_v36 }
 0x30d   : > { %3305 = vmatmul.mubr.bf16.gmra.mxu0 %v5886_v10  ;;  %v5027_v10 = vld [vmem:[%s5523_s10 + $0x308] ss:$16 sps:$4 sm:$0xff]  }
 0x30f   : > { %3336 = vmatpush2.bf16.msra.mxu1 %v5012_v48  ;;  %v2367_v48 = vld [vmem:[#allocation3 + $0x18] sm:$0xff] }
 0x310   : > { %3337 = vmatprep.subr.bf16.mxu1 %v5017_v2 }
 0x313   : > { %3338 = vmatpush2.bf16.msra.mxu1 %v5015_v3 }
 0x314   : > { %3339 = vmatprep.subr.bf16.mxu1 %v5020_v23 }
 0x317   : > { %3340 = vmatpush2.bf16.msra.mxu1 %v5018_v49  ;;  %v2370_v49 = vld [vmem:[#allocation3 + $0x8] sm:$0xff] }
 0x318   : > { %3341 = vmatprep.subr.bf16.mxu1 %v5023_v50 }
 0x31b   : > { %3342 = vmatpush2.bf16.msra.mxu1 %v5021_v52 }
 0x31c   : > { %3343 = vmatprep.subr.bf16.mxu1 %v5026_v53 }
 0x31f   : > { %3344 = vmatpush2.bf16.msra.mxu1 %v5024_v6 }
 0x320   : > { %3345 = vmatprep.subr.bf16.mxu1 %v5029_v7  ;;  %v2371_v7 = vld [vmem:[#allocation3 + $0x48] sm:$0xff] }
 0x323   : > { %3346 = vmatpush2.bf16.msra.mxu1 %v5027_v10 }
 0x326   : > { %3348 = vmatmul.mubr.bf16.vlgmr.msra.gmra.mxu1 %v5914_v61 }
 0x327   : > { %3357 = vmatprep.mubr.bf16.mxu1 %v5925_v19 }
 0x32e   : > { %3358 = vmatmul.mubr.bf16.gmra.mxu1 %v5923_v5 }
 0x385   : > { %v3190_v22 = vpop.f32.mrf.mxu0 }
 0x387   : > { %v3192_v54 = vpop.f32.mrf.mxu0 }
 0x389   : > { %v3194_v60 = vpop.f32.mrf.mxu0 }
 0x38b   : > { %v3196_v55 = vpop.f32.mrf.mxu0 }
 0x38d   : > { %v3200_v62 = vpop.f32.mrf.mxu0 }
 0x38f   : > { %v3202_v11 = vpop.f32.mrf.mxu0 }
 0x391   : > { %v3204_v33 = vpop.f32.mrf.mxu0 }
 0x393   : > { %v3206_v1 = vpop.f32.mrf.mxu0 }
 0x3a6   : > { %v3243_v43 = vpop.f32.mrf.mxu1 }
 0x3a7   : > { %v3244_v51 = vadd.f32 %v3243_v43, %v3190_v22 }
 0x3a8   : > { %v3245_v57 = vpop.f32.mrf.mxu1 }
 0x3a9   : > { %v3368_v58 = vadd.f32 %v3244_v51, %v2364_v56  ;;  %v3246_v12 = vadd.f32 %v3245_v57, %v3192_v54 }
 0x3aa   : > { %v3247_v16 = vpop.f32.mrf.mxu1 }
 0x3ab   : > { %3384 = vst [vmem:[#allocation3 + $0x30] sm:$0xff] %v3368_v58  ;;  %v3369_v61 = vadd.f32 %v3246_v12, %v2365_v4  ;;  %v3248_v18 = vadd.f32 %v3247_v16, %v3194_v60  ;;  %v2374_v60 = vld [vmem:[#allocation3 + $0x10] sm:$0xff]  ;;  %v2378_v12 = vld [vmem:[#allocation3 + $0x78] sm:$0xff] }
 0x3ac   : > { %v3249_v20 = vpop.f32.mrf.mxu1 }
 0x3ad   : > { %3385 = vst [vmem:[#allocation3] sm:$0xff] %v3369_v61  ;;  %v3372_v5 = vadd.f32 %v3248_v18, %v2368_v63  ;;  %v3250_v19 = vadd.f32 %v3249_v20, %v3196_v55 }
 0x3ae   : > { %v3253_v0 = vpop.f32.mrf.mxu1 }
 0x3af   : > { %3388 = vst [vmem:[#allocation3 + $0x50] sm:$0xff] %v3372_v5  ;;  %v3373_v29 = vadd.f32 %v3250_v19, %v2369_v13  ;;  %v3254_v30 = vadd.f32 %v3253_v0, %v3200_v62  ;;  %v2375_v62 = vld [vmem:[#allocation3 + $0x38] sm:$0xff] }
 0x3b0   : > { %v3255_v35 = vpop.f32.mrf.mxu1 }
 0x3b1   : > { %3389 = vst [vmem:[#allocation3 + $0x68] sm:$0xff] %v3373_v29  ;;  %v3376_v37 = vadd.f32 %v3254_v30, %v2372_v28  ;;  %v3256_v8 = vadd.f32 %v3255_v35, %v3202_v11  ;;  %v2379_v11 = vld [vmem:[#allocation3 + $0x28] sm:$0xff] }
 0x3b2   : > { %v3257_v39 = vpop.f32.mrf.mxu1 }
 0x3b3   : > { %3392 = vst [vmem:[#allocation3 + $0x40] sm:$0xff] %v3376_v37  ;;  %v3377_v41 = vadd.f32 %v3256_v8, %v2373_v34  ;;  %v3258_v14 = vadd.f32 %v3257_v39, %v3204_v33 }
 0x3b4   : > { %v3259_v44 = vpop.f32.mrf.mxu1 }
 0x3b5   : > { %3393 = vst [vmem:[#allocation3 + $0x20] sm:$0xff] %v3377_v41  ;;  %v3380_v40 = vadd.f32 %v3258_v14, %v2376_v38  ;;  %v3260_v9 = vadd.f32 %v3259_v44, %v3206_v1 }
 0x3b7   : > { %3396 = vst [vmem:[#allocation3 + $0x60] sm:$0xff] %v3380_v40  ;;  %v3381_v59 = vadd.f32 %v3260_v9, %v2377_v42 }
 0x3b9   : > { %3397 = vst [vmem:[#allocation3 + $0x70] sm:$0xff] %v3381_v59 }
 0x3c5   : > { %v3296_v32 = vpop.f32.mrf.mxu0 }
 0x3c7   : > { %v3298_v45 = vpop.f32.mrf.mxu0 }
 0x3c9   : > { %v3300_v46 = vpop.f32.mrf.mxu0 }
 0x3cb   : > { %v3302_v24 = vpop.f32.mrf.mxu0 }
 0x3cd   : > { %v3306_v36 = vpop.f32.mrf.mxu0 }
 0x3cf   : > { %v3308_v6 = vpop.f32.mrf.mxu0 }
 0x3d1   : > { %v3310_v51 = vpop.f32.mrf.mxu0 }
 0x3d3   : > { %v3312_v18 = vpop.f32.mrf.mxu0 }
 0x3e6   : > { %v3349_v47 = vpop.f32.mrf.mxu1 }
 0x3e7   : > { %v3350_v31 = vadd.f32 %v3349_v47, %v3296_v32 }
 0x3e8   : > { %v3351_v2 = vpop.f32.mrf.mxu1 }
 0x3e9   : > { %v3370_v3 = vadd.f32 %v3350_v31, %v2366_v26  ;;  %v3352_v23 = vadd.f32 %v3351_v2, %v3298_v45 }
 0x3ea   : > { %v3353_v50 = vpop.f32.mrf.mxu1 }
 0x3eb   : > { %3386 = vst [vmem:[#allocation3 + $0x58] sm:$0xff] %v3370_v3  ;;  %v3371_v52 = vadd.f32 %v3352_v23, %v2367_v48  ;;  %v3354_v53 = vadd.f32 %v3353_v50, %v3300_v46 }
 0x3ec   : > { %v3355_v10 = vpop.f32.mrf.mxu1 }
 0x3ed   : > { %3387 = vst [vmem:[#allocation3 + $0x18] sm:$0xff] %v3371_v52  ;;  %v3374_v22 = vadd.f32 %v3354_v53, %v2370_v49  ;;  %v3356_v54 = vadd.f32 %v3355_v10, %v3302_v24 }
 0x3ee   : > { %v3359_v55 = vpop.f32.mrf.mxu1 }
 0x3ef   : > { %3390 = vst [vmem:[#allocation3 + $0x8] sm:$0xff] %v3374_v22  ;;  %v3375_v56 = vadd.f32 %v3356_v54, %v2371_v7  ;;  %v3360_v43 = vadd.f32 %v3359_v55, %v3306_v36 }
 0x3f0   : > { %v3361_v4 = vpop.f32.mrf.mxu1 }
 0x3f1   : > { %3391 = vst [vmem:[#allocation3 + $0x48] sm:$0xff] %v3375_v56  ;;  %v3378_v57 = vadd.f32 %v3360_v43, %v2374_v60  ;;  %v3362_v58 = vadd.f32 %v3361_v4, %v3308_v6 }
 0x3f2   : > { %v3363_v63 = vpop.f32.mrf.mxu1 }
 0x3f3   : > { %3394 = vst [vmem:[#allocation3 + $0x10] sm:$0xff] %v3378_v57  ;;  %v3379_v16 = vadd.f32 %v3362_v58, %v2375_v62  ;;  %v3364_v61 = vadd.f32 %v3363_v63, %v3310_v51 }
 0x3f4   : > { %v3365_v13 = vpop.f32.mrf.mxu1 }
 0x3f5   : > { %3395 = vst [vmem:[#allocation3 + $0x38] sm:$0xff] %v3379_v16  ;;  %v3382_v20 = vadd.f32 %v3364_v61, %v2378_v12  ;;  %v3366_v5 = vadd.f32 %v3365_v13, %v3312_v18  ;;  %3403 = sbr.rel (%p4327_p13) target bundleno = 1442 (0x5a2), region = 87 }
 0x3f7   : > { %3398 = vst [vmem:[#allocation3 + $0x78] sm:$0xff] %v3382_v20  ;;  %v3383_v19 = vadd.f32 %v3366_v5, %v2379_v11 }
 0x3f9   : > { %3399 = vst [vmem:[#allocation3 + $0x28] sm:$0xff] %v3383_v19 }
 0x3fa   : > { %v5030_v28 = vld [vmem:[%s6121_s6 + $0x78] sm:$0xff]   ;;  %v5034_v33 = vld [vmem:[%s6121_s6 + $0x70] sm:$0xff]   ;;  %v5038_v8 = vld [vmem:[%s6121_s6 + $0x68] sm:$0xff]   ;;  %vm3901_vm2 = vcmask 7168  }
 0x3fb   : > { %v5031_v0 = vld [vmem:[%s6121_s6 + $0xf8] sm:$0xff]   ;;  %4431 = vmatprep.subr.bf16.mxu0 %v5030_v28  ;;  %v5035_v34 = vld [vmem:[%s6121_s6 + $0xf0] sm:$0xff]   ;;  %v5039_v38 = vld [vmem:[%s6121_s6 + $0xe8] sm:$0xff]  }
 0x3fc   : > { %v5032_v29 = vld [vmem:[%s6121_s6 + $0x38] sm:$0xff]   ;;  %4459 = vmatprep.subr.bf16.mxu1 %v5031_v0  ;;  %v5036_v35 = vld [vmem:[%s6121_s6 + $0x30] sm:$0xff]   ;;  %v5040_v39 = vld [vmem:[%s6121_s6 + $0x28] sm:$0xff]  }
 0x3fd   : > { %v5033_v30 = vld [vmem:[%s6121_s6 + $0xb8] sm:$0xff]   ;;  %4432 = vmatpush3.bf16.msra.mxu0 %v5032_v29  ;;  %v5037_v37 = vld [vmem:[%s6121_s6 + $0xb0] sm:$0xff]   ;;  %v5041_v41 = vld [vmem:[%s6121_s6 + $0xa8] sm:$0xff]  }
 0x3fe   : > { %4460 = vmatpush3.bf16.msra.mxu1 %v5033_v30  ;;  %4433 = vmatprep.subr.bf16.mxu0 %v5034_v33  ;;  %v5042_v14 = vld [vmem:[%s6121_s6 + $0x60] sm:$0xff]   ;;  %v5046_v40 = vld [vmem:[%s6121_s6 + $0x58] sm:$0xff]   ;;  %v5050_v45 = vld [vmem:[%s6121_s6 + $0x50] sm:$0xff]  }
 0x3ff   : > { %4461 = vmatprep.subr.bf16.mxu1 %v5035_v34  ;;  %v5043_v1 = vld [vmem:[%s6121_s6 + $0xe0] sm:$0xff]   ;;  %v5047_v9 = vld [vmem:[%s6121_s6 + $0xd8] sm:$0xff]   ;;  %v5051_v46 = vld [vmem:[%s6121_s6 + $0xd0] sm:$0xff]  }
 0x400   : > { %v5044_v42 = vld [vmem:[%s6121_s6 + $0x20] sm:$0xff]   ;;  %v5048_v59 = vld [vmem:[%s6121_s6 + $0x18] sm:$0xff]   ;;  %v5052_v24 = vld [vmem:[%s6121_s6 + $0x10] sm:$0xff]  }
 0x401   : > { %4434 = vmatpush3.bf16.msra.mxu0 %v5036_v35  ;;  %v5045_v44 = vld [vmem:[%s6121_s6 + $0xa0] sm:$0xff]   ;;  %v5049_v32 = vld [vmem:[%s6121_s6 + $0x98] sm:$0xff]   ;;  %v5053_v26 = vld [vmem:[%s6121_s6 + $0x90] sm:$0xff]  }
 0x402   : > { %4462 = vmatpush3.bf16.msra.mxu1 %v5037_v37  ;;  %4435 = vmatprep.subr.bf16.mxu0 %v5038_v8  ;;  %v5054_v47 = vld [vmem:[%s6121_s6 + $0x48] sm:$0xff]   ;;  %v5058_v2 = vld [vmem:[%s6121_s6 + $0x40] sm:$0xff]   ;;  %v3405_v50 = vld [vmem:[#allocation3] sm:$0xff] }
 0x403   : > { %4463 = vmatprep.subr.bf16.mxu1 %v5039_v38  ;;  %v5055_v31 = vld [vmem:[%s6121_s6 + $0xc8] sm:$0xff]   ;;  %v5059_v3 = vld [vmem:[%s6121_s6 + $0xc0] sm:$0xff]   ;;  %v3409_v52 = vld [vmem:[#allocation3 + $0x68] sm:$0xff] }
 0x404   : > { %v5056_v36 = vld [vmem:[%s6121_s6 + $0x8] sm:$0xff]   ;;  %v5060_v23 = vld [vmem:[%s6121_s6] sm:$0xff]   ;;  %v3411_v10 = vld [vmem:[#allocation3 + $0x48] sm:$0xff] }
 0x405   : > { %4436 = vmatpush3.bf16.msra.mxu0 %v5040_v39  ;;  %v5057_v48 = vld [vmem:[%s6121_s6 + $0x88] sm:$0xff]   ;;  %v5061_v49 = vld [vmem:[%s6121_s6 + $0x80] sm:$0xff]   ;;  %v3410_v51 = vld [vmem:[#allocation3 + $0x8] sm:$0xff] }
 0x406   : > { %4464 = vmatpush3.bf16.msra.mxu1 %v5041_v41  ;;  %4437 = vmatprep.subr.bf16.mxu0 %v5042_v14  ;;  %v3420_v53 = vld [vmem:[%s6117_s2 + $0x3] sm:$0xf]  ;;  %v3407_v7 = vld [vmem:[#allocation3 + $0x18] sm:$0xff]  ;;  %v3413_v61 = vld [vmem:[#allocation3 + $0x20] sm:$0xff] }
 0x407   : > { %4465 = vmatprep.subr.bf16.mxu1 %v5043_v1  ;;  %v3429_v6 = vrot.slane %v3420_v53, %v1610_v25  ;;  %v3437_v22 = vrot.slane %v3420_v53, %v1618_v17  ;;  %v3404_v54 = vld [vmem:[#allocation3 + $0x30] sm:$0xff]  ;;  %v3425_v60 = vrot.slane %v3420_v53, %v1606_v27  ;;  %v3433_v55 = vrot.slane %v3420_v53, %v1614_v15  ;;  %v3406_v43 = vld [vmem:[#allocation3 + $0x58] sm:$0xff]  ;;  %v3419_v21 = vld [vmem:[#allocation3 + $0x28] sm:$0xff] }
 0x408   : > { %v3408_v56 = vld [vmem:[#allocation3 + $0x50] sm:$0xff]  ;;  %v3415_v20 = vld [vmem:[#allocation3 + $0x38] sm:$0xff]  ;;  %v3412_v0 = vld [vmem:[#allocation3 + $0x40] sm:$0xff] }
 0x409   : > { %4438 = vmatpush3.bf16.msra.mxu0 %v5044_v42  ;;  %v3443_v62 = vadd.f32 %v3429_v6, %v3405_v50  ;;  %v3447_v4 = vadd.f32 %v3429_v6, %v3409_v52  ;;  %v3445_v57 = vadd.f32 %v3437_v22, %v3407_v7  ;;  %v3449_v58 = vadd.f32 %v3437_v22, %v3411_v10  ;;  %v3417_v17 = vld [vmem:[#allocation3 + $0x70] sm:$0xff]  ;;  %v3416_v29 = vld [vmem:[#allocation3 + $0x60] sm:$0xff]  ;;  %v3418_v8 = vld [vmem:[#allocation3 + $0x78] sm:$0xff] }
 0x40a   : > { %4466 = vmatpush3.bf16.msra.mxu1 %v5045_v44  ;;  %4439 = vmatprep.subr.bf16.mxu0 %v5046_v40  ;;  %v3442_v25 = vadd.f32 %v3425_v60, %v3404_v54  ;;  %v3446_v12 = vadd.f32 %v3425_v60, %v3408_v56  ;;  %v3444_v63 = vadd.f32 %v3433_v55, %v3406_v43  ;;  %v3414_v37 = vld [vmem:[#allocation3 + $0x10] sm:$0xff] }
 0x40b   : > { %4467 = vmatprep.subr.bf16.mxu1 %v5047_v9  ;;  %v3448_v16 = vadd.f32 %v3433_v55, %v3410_v51  ;;  %v3459_v18 = vmax.f32 %v3443_v62, 0.0  ;;  %v3463_v11 = vmax.f32 %v3447_v4, 0.0  ;;  %v3461_v13 = vmax.f32 %v3445_v57, 0.0  ;;  %v4361_v62 = vld [vmem:[%s6117_s2 + $0x8] ss:$0 sm:$0xff] }
 0x40c   : > { %v3465_v27 = vmax.f32 %v3449_v58, 0.0  ;;  %v3458_v15 = vmax.f32 %v3442_v25, 0.0  ;;  %v3462_v5 = vmax.f32 %v3446_v12, 0.0  ;;  %v3460_v19 = vmax.f32 %v3444_v63, 0.0 }
 0x40d   : > { %4440 = vmatpush3.bf16.msra.mxu0 %v5048_v59  ;;  %v3464_v28 = vmax.f32 %v3448_v16, 0.0  ;;  %v3475_v30 = vpack.c.bf16 %v3463_v11, %v3459_v18  ;;  %v3451_v34 = vadd.f32 %v3429_v6, %v3413_v61  ;;  %v3455_v35 = vadd.f32 %v3429_v6, %v3417_v17 }
 0x40e   : > { %4468 = vmatpush3.bf16.msra.mxu1 %v5049_v32  ;;  %4441 = vmatprep.subr.bf16.mxu0 %v5050_v45  ;;  %v3477_v33 = vpack.c.bf16 %v3465_v27, %v3461_v13  ;;  %v3474_v38 = vpack.c.bf16 %v3462_v5, %v3458_v15  ;;  %v3453_v41 = vadd.f32 %v3437_v22, %v3415_v20 }
 0x40f   : > { %4469 = vmatprep.subr.bf16.mxu1 %v5051_v46  ;;  %v3476_v39 = vpack.c.bf16 %v3464_v28, %v3460_v19  ;;  %v3457_v14 = vadd.f32 %v3437_v22, %v3419_v21  ;;  %3777 = vmatprep.mubr.bf16.mxu0 %v3475_v30  ;;  %v3467_v1 = vmax.f32 %v3451_v34, 0.0  ;;  %v3471_v42 = vmax.f32 %v3455_v35, 0.0 }
 0x410   : > { %3826 = vmatprep.mubr.bf16.mxu1 %v3477_v33  ;;  %v3450_v44 = vadd.f32 %v3425_v60, %v3412_v0  ;;  %v3454_v40 = vadd.f32 %v3425_v60, %v3416_v29  ;;  %v3469_v9 = vmax.f32 %v3453_v41, 0.0  ;;  %v3452_v32 = vadd.f32 %v3433_v55, %v3414_v37  ;;  %v4362_v37 = vld [vmem:[%s6117_s2 + $0x9] ss:$0 sm:$0xff] }
 0x411   : > { %4442 = vmatpush3.bf16.msra.mxu0 %v5052_v24  ;;  %v3473_v59 = vmax.f32 %v3457_v14, 0.0  ;;  %v3456_v45 = vadd.f32 %v3433_v55, %v3418_v8  ;;  %v3479_v46 = vpack.c.bf16 %v3471_v42, %v3467_v1 }
 0x412   : > { %4470 = vmatpush3.bf16.msra.mxu1 %v5053_v26  ;;  %4443 = vmatprep.subr.bf16.mxu0 %v5054_v47  ;;  %v3466_v24 = vmax.f32 %v3450_v44, 0.0  ;;  %v3470_v26 = vmax.f32 %v3454_v40, 0.0 }
 0x413   : > { %4471 = vmatprep.subr.bf16.mxu1 %v5055_v31  ;;  %v3481_v47 = vpack.c.bf16 %v3473_v59, %v3469_v9  ;;  %v3468_v31 = vmax.f32 %v3452_v32, 0.0 }
 0x415   : > { %4444 = vmatpush3.bf16.msra.mxu0 %v5056_v36  ;;  %v3472_v36 = vmax.f32 %v3456_v45, 0.0 }
 0x416   : > { %4472 = vmatpush3.bf16.msra.mxu1 %v5057_v48  ;;  %4445 = vmatprep.subr.bf16.mxu0 %v5058_v2  ;;  %v3478_v48 = vpack.c.bf16 %v3470_v26, %v3466_v24 }
 0x417   : > { %4473 = vmatprep.subr.bf16.mxu1 %v5059_v3  ;;  %v3480_v2 = vpack.c.bf16 %v3472_v36, %v3468_v31 }
 0x419   : > { %4446 = vmatpush3.bf16.msra.mxu0 %v5060_v23 }
 0x41a   : > { %4474 = vmatpush3.bf16.msra.mxu1 %v5061_v49  ;;  %v4328_v49 = vld [vmem:[%s6117_s2 + $0x7] ss:$0 sm:$0xff] }
 0x41c   : > { %3778 = vmatmul.mubr.bf16.vlgmr.msra.gmra.mxu0 %v3474_v38 }
 0x41d   : > { %3827 = vmatmul.mubr.bf16.vlgmr.msra.gmra.mxu1 %v3476_v39  ;;  %3785 = vmatprep.mubr.bf16.mxu0 %v3479_v46 }
 0x41e   : > { %3834 = vmatprep.mubr.bf16.mxu1 %v3481_v47 }
 0x424   : > { %3786 = vmatmul.mubr.bf16.gmra.mxu0 %v3478_v48 }
 0x425   : > { %3835 = vmatmul.mubr.bf16.gmra.mxu1 %v3480_v2 }
 0x4dc   : > { %v4447_v3 = vpop.f32.mrf.mxu0 }
 0x4dd   : > { %v4475_v23 = vpop.f32.mrf.mxu1 }
 0x4de   : > { %v4448_v50 = vpop.f32.mrf.mxu0 }
 0x4df   : > { %v4476_v52 = vpop.f32.mrf.mxu1  ;;  %v4449_v53 = vadd.f32 %v4448_v50, %v4447_v3 }
 0x4e0   : > { %v4450_v6 = vpop.f32.mrf.mxu0  ;;  %v4477_v22 = vadd.f32 %v4476_v52, %v4475_v23 }
 0x4e1   : > { %v4478_v7 = vpop.f32.mrf.mxu1  ;;  %v3780_v10 = vadd.f32 %v4449_v53, %v4328_v49 }
 0x4e2   : > { %v4451_v54 = vpop.f32.mrf.mxu0 }
 0x4e3   : > { %v4479_v60 = vpop.f32.mrf.mxu1  ;;  %v4452_v55 = vadd.f32 %v4451_v54, %v4450_v6  ;;  %v3829_v56 = vadd.f32 %v4477_v22, %v3780_v10 }
 0x4e4   : > { %v4453_v43 = vpop.f32.mrf.mxu0  ;;  %v4480_v57 = vadd.f32 %v4479_v60, %v4478_v7 }
 0x4e5   : > { %v4481_v51 = vpop.f32.mrf.mxu1  ;;  %v3783_v4 = vadd.f32 %v4452_v55, %v4328_v49  ;;  %v3843_v58 = vmax.f32 %v3829_v56, 0.0 }
 0x4e6   : > { %v4454_v25 = vpop.f32.mrf.mxu0 }
 0x4e7   : > { %v4482_v12 = vpop.f32.mrf.mxu1  ;;  %v3832_v63 = vadd.f32 %v4480_v57, %v3783_v4  ;;  %v4455_v16 = vadd.f32 %v4454_v25, %v4453_v43  ;;  %v3854_v61 = vmul.f32 %v4361_v62, %v3843_v58 }
 0x4e8   : > { %v4456_v17 = vpop.f32.mrf.mxu0  ;;  %v4483_v27 = vadd.f32 %v4482_v12, %v4481_v51 }
 0x4e9   : > { %v4484_v18 = vpop.f32.mrf.mxu1  ;;  %v3844_v11 = vmax.f32 %v3832_v63, 0.0  ;;  %v3788_v13 = vadd.f32 %v4455_v16, %v4328_v49  ;;  %3858 = vadd.xlane.f32.xlu0 %v3854_v61 }
 0x4ea   : > { %v4457_v20 = vpop.f32.mrf.mxu0 }
 0x4eb   : > { %v4485_v21 = vpop.f32.mrf.mxu1  ;;  %v4458_v15 = vadd.f32 %v4457_v20, %v4456_v17  ;;  %v3855_v5 = vmul.f32 %v4361_v62, %v3844_v11  ;;  %v3837_v19 = vadd.f32 %v4483_v27, %v3788_v13 }
 0x4ec   : > { %v4486_v0 = vadd.f32 %v4485_v21, %v4484_v18 }
 0x4ed   : > { %v3791_v28 = vadd.f32 %v4458_v15, %v4328_v49  ;;  %3860 = vadd.xlane.f32.xlu0 %v3855_v5  ;;  %v3845_v29 = vmax.f32 %v3837_v19, 0.0 }
 0x4ef   : > { %v3840_v30 = vadd.f32 %v4486_v0, %v3791_v28  ;;  %v3856_v33 = vmul.f32 %v4361_v62, %v3845_v29 }
 0x4f1   : > { %v3846_v34 = vmax.f32 %v3840_v30, 0.0  ;;  %3862 = vadd.xlane.f32.xlu1 %v3856_v33 }
 0x4f3   : > { %v3857_v35 = vmul.f32 %v4361_v62, %v3846_v34 }
 0x4f5   : > { %3864 = vadd.xlane.f32.xlu1 %v3857_v35 }
 0x572   : > { %v3859_v8 = vpop.xlane.xlu0 %3858 }
 0x573   : > { %v3873_v38 = vadd.f32 %v4362_v37, %v3859_v8 }
 0x575   : > { %v4363_v39 = vmul.f32 -1.442695, %v3873_v38 }
 0x576   : > { %v3861_v41 = vpop.xlane.xlu0 %3860 }
 0x577   : > { %5062 = vpow2.f32 %v4363_v39  ;;  %v3874_v14 = vadd.f32 %v4362_v37, %v3861_v41 }
 0x579   : > { %v4364_v1 = vmul.f32 -1.442695, %v3874_v14 }
 0x57a   : > { %v3863_v42 = vpop.xlane.xlu1 %3862 }
 0x57b   : > { %5064 = vpow2.f32 %v4364_v1  ;;  %v3875_v44 = vadd.f32 %v4362_v37, %v3863_v42 }
 0x57d   : > { %v4365_v40 = vmul.f32 -1.442695, %v3875_v44 }
 0x57e   : > { %v3865_v9 = vpop.xlane.xlu1 %3864 }
 0x57f   : > { %5066 = vpow2.f32 %v4365_v40  ;;  %v3876_v59 = vadd.f32 %v4362_v37, %v3865_v9 }
 0x581   : > { %v4366_v32 = vmul.f32 -1.442695, %v3876_v59 }
 0x583   : > { %5068 = vpow2.f32 %v4366_v32 }
 0x584   : > { %v5063_v45 = vpop.eup %5062 }
 0x585   : > { %v3889_v46 = vadd.f32 1.0, %v5063_v45 }
 0x587   : > { %5070 = vrcp.f32 %v3889_v46 }
 0x588   : > { %v5065_v24 = vpop.eup %5064 }
 0x589   : > { %v3890_v26 = vadd.f32 1.0, %v5065_v24 }
 0x58b   : > { %5072 = vrcp.f32 %v3890_v26 }
 0x58c   : > { %v5067_v47 = vpop.eup %5066 }
 0x58d   : > { %v3891_v31 = vadd.f32 1.0, %v5067_v47 }
 0x58f   : > { %5074 = vrcp.f32 %v3891_v31 }
 0x590   : > { %v5069_v36 = vpop.eup %5068 }
 0x591   : > { %v3892_v48 = vadd.f32 1.0, %v5069_v36 }
 0x593   : > { %5076 = vrcp.f32 %v3892_v48 }
 0x594   : > { %v5071_v2 = vpop.eup %5070 }
 0x595   : > { %3902 = vst.msk [vmem:[%s6122_s7] sm:$0xff] %vm3901_vm2, %v5071_v2 }
 0x598   : > { %v5073_v3 = vpop.eup %5072 }
 0x599   : > { %3903 = vst.msk [vmem:[%s6122_s7 + $0x8] sm:$0xff] %vm3901_vm2, %v5073_v3 }
 0x59c   : > { %v5075_v23 = vpop.eup %5074 }
 0x59d   : > { %3904 = vst.msk [vmem:[%s6122_s7 + $0x10] sm:$0xff] %vm3901_vm2, %v5075_v23 }
 0x5a0   : > { %v5077_v49 = vpop.eup %5076 }
 0x5a1   : > { %3905 = vst.msk [vmem:[%s6122_s7 + $0x18] sm:$0xff] %vm3901_vm2, %v5077_v49 }
 0x5a2 PF: > { %p18_p0 = scmp.ge.s32.totalorder %s5241_s29, 4   ;;  %s6132_s24 = smov %s5160_s25 }
 0x5a3   : > { %s6133_s25 = smov %s5164_s26  ;;  %s6134_s26 = smov %s5251_s9 }
 0x5a4   : > { %s6135_s27 = smov %s5241_s29  ;;  %20 = sbr.rel (!%p18_p0) target bundleno = 4 (0x4), region = 131 }
 0x5a9   :  { %3917 = vsyncpa [#allocation5], 1 }
 0x5aa   :  { %3919 = vsyncpa [#allocation5 + $0x1], 1 }
 0x5ab   :  { %3920 = vsyncpa [#allocation8], 1 }
 0x5ac   :  { %3922 = vsyncpa [#allocation8 + $0x1], 1 }

</bundles_post_ra>
